<compile_context>
chip_gen: v7x
topology: tpu7x:2x2x1
jax: 0.10.0
libtpu: 0.0.40
codegen_flags: <defaults>
</compile_context>

<pallas_src>
import functools

import jax
import jax.numpy as jnp
from jax.experimental import pallas as pl
from jax.experimental.pallas import tpu as pltpu


_COMPUTE_DTYPE = jnp.bfloat16     # MXU input dtype (accumulation is always f32)
_LANE = 128                       # pad output channels to this multiple (lane-dense vst)
_SUBLANE = 16                     # bf16 packs 16 rows per sublane-packed vreg


def _round_up(x, m):
    return (x + m - 1) // m * m


def _vmem_capacity_bytes():
    """Generation-aware physical VMEM size (falls back to the v7x 64 MiB floor)."""
    default = 64 * 1024 * 1024
    try:
        info = pltpu.get_tpu_info()
        cap = int(getattr(info, "vmem_capacity_bytes", 0))
        return cap if cap >= 16 * 1024 * 1024 else default
    except Exception:
        return default


_VMEM_CAP = _vmem_capacity_bytes()
_VMEM_LIMIT = int(_VMEM_CAP * 0.75)    # scoped budget handed to Mosaic
_TILE_BUDGET = int(_VMEM_CAP * 0.55)   # what our own tile sizing targets (headroom left)


# ----------------------------- Pallas kernels ------------------------------ #

def _fused_conv_kernel(x_ref, w_ref, o_ref, *, out_h, out_w, taps_h, taps_w,
                       leaky_slope):
    """Fused conv (stride-1 tap decomposition) + LeakyReLU.

    x_ref: (NB, Hk, Wk, Ck) bf16 image chunk (VMEM resident)
    w_ref: (taps_h*taps_w, Ck, Coutp) bf16, grid-invariant (resident)
    o_ref: (NB*out_h*out_w, Coutp) bf16, lane dense
    """
    nb = x_ref.shape[0]
    m = nb * out_h * out_w
    coutp = o_ref.shape[-1]
    acc = jnp.zeros((m, coutp), jnp.float32)
    for i in range(taps_h):
        for j in range(taps_w):
            patch = x_ref[:, i:i + out_h, j:j + out_w, :]      # (NB, OH, OW, Ck)
            acc = acc + jnp.dot(patch.reshape(m, patch.shape[-1]),
                                w_ref[i * taps_w + j],
                                preferred_element_type=jnp.float32)
    y = jnp.maximum(acc, leaky_slope * acc)                    # one vmul + one vmax
    o_ref[...] = y.astype(o_ref.dtype)


def _matmul_act_kernel(x_ref, w_ref, o_ref, *, leaky_slope):
    """o = leaky_relu(x @ w) for the im2col fallback path."""
    y = jnp.dot(x_ref[...], w_ref[...], preferred_element_type=jnp.float32)
    if leaky_slope is not None:
        y = jnp.maximum(y, leaky_slope * y)
    o_ref[...] = y.astype(o_ref.dtype)


def _final_mean_kernel(x_ref, w_ref, o_ref):
    """mean_b(x_b @ w) == (mean_b x_b) @ w : single-step final conv + batch mean."""
    xm = jnp.mean(x_ref[...].astype(jnp.float32), axis=0, keepdims=True)   # (1, K)
    o_ref[...] = jnp.dot(xm, w_ref[...].astype(jnp.float32),
                         preferred_element_type=jnp.float32)


# --------------------------- tile / chunk sizing ---------------------------- #

def _pick_batch_chunk(n, in_ps, out_ps, work_ps, w_bytes):
    """Largest per-grid-step batch chunk that fits the VMEM budget (balanced)."""
    fixed = 2 * w_bytes                            # resident weight (double-buffered)
    per = 2 * in_ps + 2 * out_ps + work_ps         # double-buffered in/out + temporaries
    avail = max(_TILE_BUDGET - fixed, per)
    nb_max = int(max(1, min(n, avail // per)))
    chunks = -(-n // nb_max)
    return -(-n // chunks)                         # minimal padding


def _pick_tiles(M, K, Np):
    """(tm, tn) for the fallback matmul, sized against the VMEM budget."""
    tn = Np
    while (tn > _LANE and 2 * K * tn * 2 > _TILE_BUDGET // 3
           and Np % (tn // 2) == 0 and (tn // 2) % _LANE == 0):
        tn //= 2
    fixed = 2 * K * tn * 2                         # resident (K, tn) weight slab
    per_row = 2 * K * 2 + 2 * tn * 2 + tn * 4      # streamed x, out, f32 temp
    tm = int(max(_TILE_BUDGET - fixed, _SUBLANE * per_row) // per_row)
    tm = max(_SUBLANE, min(1024, (tm // _SUBLANE) * _SUBLANE))
    tm = min(tm, _round_up(M, _SUBLANE))
    return tm, tn


# ------------------------- fused conv (main path) --------------------------- #

def _conv_fused(x_nhwc, w_hwio, stride, leaky_slope):
    N, H, W, Cs = x_nhwc.shape               # Cs = stored (lane-padded) channels
    kh, kw, cin, cout = w_hwio.shape
    coutp = _round_up(cout, _LANE)

    w = w_hwio.astype(_COMPUTE_DTYPE)
    if cin != Cs:                             # stored activation channels are zero padded
        w = jnp.pad(w, ((0, 0), (0, 0), (0, Cs - cin), (0, 0)))
    if cout != coutp:
        w = jnp.pad(w, ((0, 0), (0, 0), (0, 0), (0, coutp - cout)))

    x_pad = jnp.pad(x_nhwc, ((0, 0), (1, 1), (1, 1), (0, 0)))

    if stride == 2:
        # 4x4/s2/p1 conv == 2x2/s1 conv over the 2x2 space-to-depth of the padded input.
        oh, ow = H // 2, W // 2
        Hk, Wk, Ck = (H + 2) // 2, (W + 2) // 2, 4 * Cs
        xk = (x_pad.reshape(N, Hk, 2, Wk, 2 * Cs)
                    .transpose(0, 1, 3, 2, 4)
                    .reshape(N, Hk, Wk, Ck))
        # w[2a+di, 2g+dj, c, :]  ->  wt[(a,g), (di,dj,c), :]
        wt = (w.reshape(2, 2, 2, 2, Cs, coutp)
                .transpose(0, 2, 1, 3, 4, 5)
                .reshape(4, Ck, coutp))
        taps_h, taps_w = 2, 2
    else:
        # 3x3/s1/p1 conv: taps are shifted windows of the padded input.
        oh, ow = H, W
        Hk, Wk, Ck = H + 2, W + 2, Cs
        xk = x_pad
        wt = w.reshape(kh * kw, Cs, coutp)
        taps_h, taps_w = kh, kw

    in_ps = Hk * Wk * Ck * 2
    out_ps = oh * ow * coutp * 2
    work_ps = oh * ow * (coutp * 4 + 2 * Ck * 2)          # f32 acc + live bf16 patches
    w_bytes = taps_h * taps_w * Ck * coutp * 2
    nb = _pick_batch_chunk(N, in_ps, out_ps, work_ps, w_bytes)

    n_pad = _round_up(N, nb)
    if n_pad != N:
        xk = jnp.pad(xk, ((0, n_pad - N), (0, 0), (0, 0), (0, 0)))

    mb = nb * oh * ow
    m_total = n_pad * oh * ow

    cost = pl.CostEstimate(
        flops=2 * m_total * taps_h * taps_w * Ck * coutp,
        transcendentals=0,
        bytes_accessed=n_pad * in_ps + w_bytes + m_total * coutp * 2)

    out2d = pl.pallas_call(
        functools.partial(_fused_conv_kernel, out_h=oh, out_w=ow,
                          taps_h=taps_h, taps_w=taps_w, leaky_slope=leaky_slope),
        out_shape=jax.ShapeDtypeStruct((m_total, coutp), _COMPUTE_DTYPE),
        grid=(n_pad // nb,),
        in_specs=[
            pl.BlockSpec((nb, Hk, Wk, Ck), lambda i: (i, 0, 0, 0)),
            # TODO(synk): single-buffer this grid-invariant weight block once
            # pipeline_mode=pl.Buffered(1) is confirmed supported.
            pl.BlockSpec((taps_h * taps_w, Ck, coutp), lambda i: (0, 0, 0)),
        ],
        out_specs=pl.BlockSpec((mb, coutp), lambda i: (i, 0)),   # lane dense
        compiler_params=pltpu.CompilerParams(
            dimension_semantics=("parallel",),
            vmem_limit_bytes=_VMEM_LIMIT),
        cost_estimate=cost,
    )(xk, wt)

    return out2d[: N * oh * ow].reshape(N, oh, ow, coutp)


# ----------------------- im2col fallback (tiny layers) ----------------------- #

def _im2col(x_nhwc, kh, kw, stride, pad):
    """Extract conv patches -> (N*OH*OW, KH*KW*C).  Pure data movement (glue)."""
    if pad:
        x_nhwc = jnp.pad(x_nhwc, ((0, 0), (pad, pad), (pad, pad), (0, 0)))
    N, H, W, C = x_nhwc.shape
    oh = (H - kh) // stride + 1
    ow = (W - kw) // stride + 1
    cols = []
    for i in range(kh):
        for j in range(kw):
            cols.append(x_nhwc[:,
                               i:i + (oh - 1) * stride + 1:stride,
                               j:j + (ow - 1) * stride + 1:stride,
                               :])
    cols = jnp.stack(cols, axis=3)                 # (N, oh, ow, kh*kw, C)
    cols = cols.reshape(N, oh, ow, kh * kw * C)
    return cols.reshape(N * oh * ow, kh * kw * C), (N, oh, ow)


def _tiled_matmul_act(x2d, w2d, leaky_slope, out_dtype):
    """(M, N)-tiled matmul + LeakyReLU; (K, tn) weight slab resident along M."""
    M, K = x2d.shape
    _, Np = w2d.shape
    tm, tn = _pick_tiles(M, K, Np)

    mp = _round_up(M, tm)
    if mp != M:
        x2d = jnp.pad(x2d, ((0, mp - M), (0, 0)))

    cost = pl.CostEstimate(
        flops=2 * mp * K * Np,
        transcendentals=0,
        bytes_accessed=mp * K * 2 + K * Np * 2 + mp * Np * 2)

    # TODO(synk): add a K-tiled accumulating variant for configs where even a
    # (K, 128) weight slab overflows VMEM (very wide layers on v7x).
    out = pl.pallas_call(
        functools.partial(_matmul_act_kernel, leaky_slope=leaky_slope),
        out_shape=jax.ShapeDtypeStruct((mp, Np), out_dtype),
        grid=(Np // tn, mp // tm),                              # M is the fast axis
        in_specs=[pl.BlockSpec((tm, K), lambda j, i: (i, 0)),   # streamed x tiles
                  pl.BlockSpec((K, tn), lambda j, i: (0, j))],  # resident along M
        out_specs=pl.BlockSpec((tm, tn), lambda j, i: (i, j)),  # lane dense
        compiler_params=pltpu.CompilerParams(
            dimension_semantics=("parallel", "parallel"),
            vmem_limit_bytes=_VMEM_LIMIT),
        cost_estimate=cost,
    )(x2d, w2d.astype(_COMPUTE_DTYPE))
    return out[:M] if mp != M else out


def _conv_im2col(x_nhwc, w_hwio, stride, pad, leaky_slope):
    # TODO(synk): only the smallest (4x4-output) layer lands here; fuse it too once
    # non-multiple-of-8 output widths are handled in-kernel.
    kh, kw, cin, cout = w_hwio.shape
    N, H, W, Cs = x_nhwc.shape
    coutp = _round_up(cout, _LANE)
    w = w_hwio.astype(_COMPUTE_DTYPE)
    if cin != Cs:
        w = jnp.pad(w, ((0, 0), (0, 0), (0, Cs - cin), (0, 0)))
    w2d = w.reshape(kh * kw * Cs, cout)
    if coutp != cout:
        w2d = jnp.pad(w2d, ((0, 0), (0, coutp - cout)))
    x2d, (n, oh, ow) = _im2col(x_nhwc, kh, kw, stride, pad)
    y2d = _tiled_matmul_act(x2d, w2d, leaky_slope, _COMPUTE_DTYPE)
    return y2d.reshape(n, oh, ow, coutp)


# ------------------------------ layer wrappers ------------------------------- #

def conv2d_leaky(x_nhwc, w_hwio, stride, leaky_slope=0.2):
    """Conv2d(pad=1, bias=False) + LeakyReLU.  NHWC activations, HWIO weights."""
    kh, kw, _, _ = w_hwio.shape
    _, H, W, _ = x_nhwc.shape
    ow = (W + 2 - kw) // stride + 1
    fusable = (ow % 8 == 0) and (
        (stride == 2 and kh == 4 and kw == 4 and H % 2 == 0 and W % 2 == 0)
        or (stride == 1 and kh == kw))
    if fusable:
        return _conv_fused(x_nhwc, w_hwio, stride, leaky_slope)
    return _conv_im2col(x_nhwc, w_hwio, stride, 1, leaky_slope)


def final_conv_mean(x_nhwc, w_hwio):
    """Final 4x4 'valid' conv (cout=1) + mean over the batch -> shape (1,)."""
    N, H, W, Cs = x_nhwc.shape                 # H == W == 4
    kh, kw, cin, cout = w_hwio.shape
    coutp = _round_up(cout, _LANE)
    w = w_hwio.astype(_COMPUTE_DTYPE)
    if cin != Cs:
        w = jnp.pad(w, ((0, 0), (0, 0), (0, Cs - cin), (0, 0)))
    w2d = w.reshape(kh * kw * Cs, cout)
    w2d = jnp.pad(w2d, ((0, 0), (0, coutp - cout)))

    K = H * W * Cs
    x2d = x_nhwc.reshape(N, K)                 # the "patch" is the whole feature map

    out = pl.pallas_call(
        _final_mean_kernel,
        out_shape=jax.ShapeDtypeStruct((1, coutp), jnp.float32),
        grid=(1,),
        in_specs=[pl.BlockSpec((N, K), lambda i: (0, 0)),
                  pl.BlockSpec((K, coutp), lambda i: (0, 0))],
        out_specs=pl.BlockSpec((1, coutp), lambda i: (0, 0)),
        compiler_params=pltpu.CompilerParams(
            dimension_semantics=("arbitrary",),
            vmem_limit_bytes=_VMEM_LIMIT),
    )(x2d, w2d)
    return out[0, :1]                          # matches .mean(0).view(1)


# ------------------------- module params / forward -------------------------- #

def init_params(key, isize, nz, nc, ndf, n_extra_layers=0):
    """Deterministic synthetic weights with the exact shapes DCGAN_D_nobn builds."""
    del nz  # unused by the discriminator (kept for signature parity)
    assert isize % 16 == 0, "isize has to be a multiple of 16"
    keys = iter(jax.random.split(key, 16))

    params = {}
    params["w_initial"] = 0.02 * jax.random.normal(next(keys), (4, 4, nc, ndf), jnp.float32)
    csize, cndf = isize // 2, ndf

    params["w_extra"] = []
    for _ in range(n_extra_layers):
        params["w_extra"].append(
            0.02 * jax.random.normal(next(keys), (3, 3, cndf, cndf), jnp.float32))

    params["w_pyramid"] = []
    while csize > 4:
        params["w_pyramid"].append(
            0.02 * jax.random.normal(next(keys), (4, 4, cndf, cndf * 2), jnp.float32))
        cndf *= 2
        csize //= 2

    params["w_final"] = 0.02 * jax.random.normal(next(keys), (4, 4, cndf, 1), jnp.float32)
    return params


def dcgan_d_nobn_forward(x_nchw, params):
    x = jnp.transpose(x_nchw, (0, 2, 3, 1)).astype(_COMPUTE_DTYPE)   # NCHW->NHWC, bf16 once
    x = conv2d_leaky(x, params["w_initial"], stride=2)
    for w in params["w_extra"]:
        x = conv2d_leaky(x, w, stride=1)
    for w in params["w_pyramid"]:
        x = conv2d_leaky(x, w, stride=2)
    return final_conv_mean(x, params["w_final"])                     # shape (1,)


# ------------------------------- reference ----------------------------------- #

def reference_forward(x_nchw, params):
    """Same math with lax convs; matches the kernel's bf16-input / f32-acc precision."""
    x = jnp.transpose(x_nchw, (0, 2, 3, 1))

    def conv(x, w, stride, pad):
        return jax.lax.conv_general_dilated(
            x.astype(_COMPUTE_DTYPE), w.astype(_COMPUTE_DTYPE),
            (stride, stride), [(pad, pad), (pad, pad)],
            dimension_numbers=("NHWC", "HWIO", "NHWC"),
            preferred_element_type=jnp.float32)

    def lrelu(v):
        return jnp.maximum(v, 0.2 * v)

    x = lrelu(conv(x, params["w_initial"], 2, 1)).astype(_COMPUTE_DTYPE)
    for w in params["w_extra"]:
        x = lrelu(conv(x, w, 1, 1)).astype(_COMPUTE_DTYPE)
    for w in params["w_pyramid"]:
        x = lrelu(conv(x, w, 2, 1)).astype(_COMPUTE_DTYPE)
    x = conv(x, params["w_final"], 1, 0)          # (N, 1, 1, 1) f32
    return jnp.mean(x, axis=0).reshape(1)


# --------------------------------- main -------------------------------------- #

if __name__ == "__main__":
    key = jax.random.PRNGKey(0)
    k_in, k_par = jax.random.split(key)

    # small shapes consistent with the module: isize=16, nc=4, ndf=8, batch=2
    isize, nz, nc, ndf, n_extra = 16, 8, 4, 8, 0
    batch = 2

    x = jax.random.normal(k_in, (batch, nc, isize, isize), jnp.float32)
    params_f32 = init_params(k_par, isize, nz, nc, ndf, n_extra)
    # pre-cast parameters to the MXU input dtype once, outside the jitted forward
    params = jax.tree_util.tree_map(lambda a: a.astype(_COMPUTE_DTYPE), params_f32)

    fwd = jax.jit(dcgan_d_nobn_forward)
    out = jax.block_until_ready(fwd(x, params))

    ref = jax.block_until_ready(reference_forward(x, params))
    assert out.shape == (1,), out.shape
    assert jnp.allclose(out, ref, atol=2e-3, rtol=2e-3), (out, ref)

    print("KERNEL_OK")
</pallas_src>

<mosaic_0001>
module attributes {stable_mosaic.version = 11 : i64} {
  func.func @_fused_conv_kernel(%arg0: i32, %arg1: memref<2x9x9x16xbf16, #tpu.memory_space<vmem>>, %arg2: memref<4x16x128xbf16, #tpu.memory_space<vmem>>, %arg3: memref<128x128xbf16, #tpu.memory_space<vmem>>) attributes {dimension_semantics = [#tpu.dimension_semantics<parallel>], iteration_bounds = array<i64: 1>, scalar_prefetch = 0 : i64, scratch_operands = 0 : i64, tpu.core_type = #tpu.core_type<tc>, window_params = [{transform_indices = @transform_0, window_bounds = array<i64: 2, 9, 9, 16>}, {pipeline_mode = #tpu.pipeline_mode<synchronous>, transform_indices = @transform_1, window_bounds = array<i64: 4, 16, 128>}, {transform_indices = @transform_2, window_bounds = array<i64: 128, 128>}]} {
    %cst = arith.constant 0.000000e+00 : f32
    %0 = vector.broadcast %cst : f32 to vector<128x128xf32>
    %c0 = arith.constant 0 : index
    %c0_0 = arith.constant 0 : index
    %c0_1 = arith.constant 0 : index
    %c0_2 = arith.constant 0 : index
    %1 = vector.load %arg1[%c0, %c0_0, %c0_1, %c0_2] : memref<2x9x9x16xbf16, #tpu.memory_space<vmem>>, vector<2x8x8x16xbf16>
    %2 = vector.shape_cast %1 : vector<2x8x8x16xbf16> to vector<128x16xbf16>
    %c0_3 = arith.constant 0 : index
    %c0_4 = arith.constant 0 : index
    %c0_5 = arith.constant 0 : index
    %3 = vector.load %arg2[%c0_3, %c0_4, %c0_5] : memref<4x16x128xbf16, #tpu.memory_space<vmem>>, vector<1x16x128xbf16>
    %4 = vector.shape_cast %3 : vector<1x16x128xbf16> to vector<16x128xbf16>
    %cst_6 = arith.constant dense<0.000000e+00> : vector<128x128xf32>
    %5 = tpu.matmul %2, %4, %cst_6 {dimension_numbers = #tpu.dot_dimension_numbers<[1], [0], [0], [1], [0, 0, 1, 1], [], []>} : vector<128x16xbf16>, vector<16x128xbf16>, vector<128x128xf32> -> vector<128x128xf32>
    %6 = arith.addf %0, %5 : vector<128x128xf32>
    %c0_7 = arith.constant 0 : index
    %c0_8 = arith.constant 0 : index
    %c1 = arith.constant 1 : index
    %c0_9 = arith.constant 0 : index
    %7 = vector.load %arg1[%c0_7, %c0_8, %c1, %c0_9] : memref<2x9x9x16xbf16, #tpu.memory_space<vmem>>, vector<2x8x8x16xbf16>
    %8 = vector.shape_cast %7 : vector<2x8x8x16xbf16> to vector<128x16xbf16>
    %c1_10 = arith.constant 1 : index
    %c0_11 = arith.constant 0 : index
    %c0_12 = arith.constant 0 : index
    %9 = vector.load %arg2[%c1_10, %c0_11, %c0_12] : memref<4x16x128xbf16, #tpu.memory_space<vmem>>, vector<1x16x128xbf16>
    %10 = vector.shape_cast %9 : vector<1x16x128xbf16> to vector<16x128xbf16>
    %cst_13 = arith.constant dense<0.000000e+00> : vector<128x128xf32>
    %11 = tpu.matmul %8, %10, %cst_13 {dimension_numbers = #tpu.dot_dimension_numbers<[1], [0], [0], [1], [0, 0, 1, 1], [], []>} : vector<128x16xbf16>, vector<16x128xbf16>, vector<128x128xf32> -> vector<128x128xf32>
    %12 = arith.addf %6, %11 : vector<128x128xf32>
    %c0_14 = arith.constant 0 : index
    %c1_15 = arith.constant 1 : index
    %c0_16 = arith.constant 0 : index
    %c0_17 = arith.constant 0 : index
    %13 = vector.load %arg1[%c0_14, %c1_15, %c0_16, %c0_17] : memref<2x9x9x16xbf16, #tpu.memory_space<vmem>>, vector<2x8x8x16xbf16>
    %14 = vector.shape_cast %13 : vector<2x8x8x16xbf16> to vector<128x16xbf16>
    %c2 = arith.constant 2 : index
    %c0_18 = arith.constant 0 : index
    %c0_19 = arith.constant 0 : index
    %15 = vector.load %arg2[%c2, %c0_18, %c0_19] : memref<4x16x128xbf16, #tpu.memory_space<vmem>>, vector<1x16x128xbf16>
    %16 = vector.shape_cast %15 : vector<1x16x128xbf16> to vector<16x128xbf16>
    %cst_20 = arith.constant dense<0.000000e+00> : vector<128x128xf32>
    %17 = tpu.matmul %14, %16, %cst_20 {dimension_numbers = #tpu.dot_dimension_numbers<[1], [0], [0], [1], [0, 0, 1, 1], [], []>} : vector<128x16xbf16>, vector<16x128xbf16>, vector<128x128xf32> -> vector<128x128xf32>
    %18 = arith.addf %12, %17 : vector<128x128xf32>
    %c0_21 = arith.constant 0 : index
    %c1_22 = arith.constant 1 : index
    %c1_23 = arith.constant 1 : index
    %c0_24 = arith.constant 0 : index
    %19 = vector.load %arg1[%c0_21, %c1_22, %c1_23, %c0_24] : memref<2x9x9x16xbf16, #tpu.memory_space<vmem>>, vector<2x8x8x16xbf16>
    %20 = vector.shape_cast %19 : vector<2x8x8x16xbf16> to vector<128x16xbf16>
    %c3 = arith.constant 3 : index
    %c0_25 = arith.constant 0 : index
    %c0_26 = arith.constant 0 : index
    %21 = vector.load %arg2[%c3, %c0_25, %c0_26] : memref<4x16x128xbf16, #tpu.memory_space<vmem>>, vector<1x16x128xbf16>
    %22 = vector.shape_cast %21 : vector<1x16x128xbf16> to vector<16x128xbf16>
    %cst_27 = arith.constant dense<0.000000e+00> : vector<128x128xf32>
    %23 = tpu.matmul %20, %22, %cst_27 {dimension_numbers = #tpu.dot_dimension_numbers<[1], [0], [0], [1], [0, 0, 1, 1], [], []>} : vector<128x16xbf16>, vector<16x128xbf16>, vector<128x128xf32> -> vector<128x128xf32>
    %24 = arith.addf %18, %23 : vector<128x128xf32>
    %cst_28 = arith.constant 2.000000e-01 : f32
    %25 = vector.broadcast %cst_28 : f32 to vector<128x128xf32>
    %26 = arith.mulf %25, %24 : vector<128x128xf32>
    %27 = arith.maximumf %24, %26 : vector<128x128xf32>
    %28 = arith.truncf %27 : vector<128x128xf32> to vector<128x128xbf16>
    %c0_29 = arith.constant 0 : index
    %c0_30 = arith.constant 0 : index
    %29 = vector.load %arg3[%c0_29, %c0_30] : memref<128x128xbf16, #tpu.memory_space<vmem>>, vector<128x128xbf16>
    tpu.vector_store %arg3[%c0_29, %c0_30], %28 {strides = array<i32>} : memref<128x128xbf16, #tpu.memory_space<vmem>>, vector<128x128xbf16>,
    return
  }
  func.func @transform_0(%arg0: i32) -> (i32, i32, i32, i32) {
    %c0_i32 = arith.constant 0 : i32
    %c0_i32_0 = arith.constant 0 : i32
    %c0_i32_1 = arith.constant 0 : i32
    %c0_i32_2 = arith.constant 0 : i32
    return %arg0, %c0_i32, %c0_i32_0, %c0_i32_1 : i32, i32, i32, i32
  }
  func.func @transform_1(%arg0: i32) -> (i32, i32, i32) {
    %c0_i32 = arith.constant 0 : i32
    %c0_i32_0 = arith.constant 0 : i32
    %c0_i32_1 = arith.constant 0 : i32
    %c0_i32_2 = arith.constant 0 : i32
    return %c0_i32, %c0_i32_0, %c0_i32_1 : i32, i32, i32
  }
  func.func @transform_2(%arg0: i32) -> (i32, i32) {
    %c0_i32 = arith.constant 0 : i32
    %c0_i32_0 = arith.constant 0 : i32
    return %arg0, %c0_i32 : i32, i32
  }
}

module attributes {stable_mosaic.version = 11 : i64} {
  func.func @_matmul_act_kernel(%arg0: i32, %arg1: i32, %arg2: memref<32x2048xbf16, #tpu.memory_space<vmem>>, %arg3: memref<2048x128xbf16, #tpu.memory_space<vmem>>, %arg4: memref<32x128xbf16, #tpu.memory_space<vmem>>) attributes {dimension_semantics = [#tpu.dimension_semantics<parallel>, #tpu.dimension_semantics<parallel>], iteration_bounds = array<i64: 1, 1>, scalar_prefetch = 0 : i64, scratch_operands = 0 : i64, tpu.core_type = #tpu.core_type<tc>, window_params = [{transform_indices = @transform_0, window_bounds = array<i64: 32, 2048>}, {transform_indices = @transform_1, window_bounds = array<i64: 2048, 128>}, {transform_indices = @transform_2, window_bounds = array<i64: 32, 128>}]} {
    %c0 = arith.constant 0 : index
    %c0_0 = arith.constant 0 : index
    %0 = vector.load %arg2[%c0, %c0_0] : memref<32x2048xbf16, #tpu.memory_space<vmem>>, vector<32x2048xbf16>
    %c0_1 = arith.constant 0 : index
    %c0_2 = arith.constant 0 : index
    %1 = vector.load %arg3[%c0_1, %c0_2] : memref<2048x128xbf16, #tpu.memory_space<vmem>>, vector<2048x128xbf16>
    %cst = arith.constant dense<0.000000e+00> : vector<32x128xf32>
    %2 = tpu.matmul %0, %1, %cst {dimension_numbers = #tpu.dot_dimension_numbers<[1], [0], [0], [1], [0, 0, 1, 1], [], []>} : vector<32x2048xbf16>, vector<2048x128xbf16>, vector<32x128xf32> -> vector<32x128xf32>
    %cst_3 = arith.constant 2.000000e-01 : f32
    %3 = vector.broadcast %cst_3 : f32 to vector<32x128xf32>
    %4 = arith.mulf %3, %2 : vector<32x128xf32>
    %5 = arith.maximumf %2, %4 : vector<32x128xf32>
    %6 = arith.truncf %5 : vector<32x128xf32> to vector<32x128xbf16>
    %c0_4 = arith.constant 0 : index
    %c0_5 = arith.constant 0 : index
    %7 = vector.load %arg4[%c0_4, %c0_5] : memref<32x128xbf16, #tpu.memory_space<vmem>>, vector<32x128xbf16>
    tpu.vector_store %arg4[%c0_4, %c0_5], %6 {strides = array<i32>} : memref<32x128xbf16, #tpu.memory_space<vmem>>, vector<32x128xbf16>,
    return
  }
  func.func @transform_0(%arg0: i32, %arg1: i32) -> (i32, i32) {
    %c0_i32 = arith.constant 0 : i32
    %c0_i32_0 = arith.constant 0 : i32
    return %arg1, %c0_i32 : i32, i32
  }
  func.func @transform_1(%arg0: i32, %arg1: i32) -> (i32, i32) {
    %c0_i32 = arith.constant 0 : i32
    %c0_i32_0 = arith.constant 0 : i32
    return %c0_i32, %arg0 : i32, i32
  }
  func.func @transform_2(%arg0: i32, %arg1: i32) -> (i32, i32) {
    %c0_i32 = arith.constant 0 : i32
    return %arg1, %arg0 : i32, i32
  }
}

module attributes {stable_mosaic.version = 11 : i64} {
  func.func @_final_mean_kernel(%arg0: i32, %arg1: memref<2x2048xbf16, #tpu.memory_space<vmem>>, %arg2: memref<2048x128xbf16, #tpu.memory_space<vmem>>, %arg3: memref<1x128xf32, #tpu.memory_space<vmem>>) attributes {dimension_semantics = [#tpu.dimension_semantics<arbitrary>], iteration_bounds = array<i64: 1>, scalar_prefetch = 0 : i64, scratch_operands = 0 : i64, tpu.core_type = #tpu.core_type<tc>, window_params = [{pipeline_mode = #tpu.pipeline_mode<synchronous>, transform_indices = @transform_0, window_bounds = array<i64: 2, 2048>}, {pipeline_mode = #tpu.pipeline_mode<synchronous>, transform_indices = @transform_1, window_bounds = array<i64: 2048, 128>}, {pipeline_mode = #tpu.pipeline_mode<synchronous>, transform_indices = @transform_2, window_bounds = array<i64: 1, 128>}]} {
    %c0 = arith.constant 0 : index
    %c0_0 = arith.constant 0 : index
    %0 = vector.load %arg1[%c0, %c0_0] : memref<2x2048xbf16, #tpu.memory_space<vmem>>, vector<2x2048xbf16>
    %1 = arith.extf %0 : vector<2x2048xbf16> to vector<2x2048xf32>
    %cst = arith.constant dense<0.000000e+00> : vector<2048xf32>
    %2 = vector.multi_reduction <add>, %1, %cst [0] : vector<2x2048xf32> to vector<2048xf32>
    %3 = vector.shape_cast %2 : vector<2048xf32> to vector<1x2048xf32>
    %cst_1 = arith.constant 2.000000e+00 : f32
    %4 = vector.broadcast %cst_1 : f32 to vector<1x2048xf32>
    %5 = arith.divf %3, %4 : vector<1x2048xf32>
    %c0_2 = arith.constant 0 : index
    %c0_3 = arith.constant 0 : index
    %6 = vector.load %arg2[%c0_2, %c0_3] : memref<2048x128xbf16, #tpu.memory_space<vmem>>, vector<2048x128xbf16>
    %7 = arith.extf %6 : vector<2048x128xbf16> to vector<2048x128xf32>
    %cst_4 = arith.constant dense<0.000000e+00> : vector<1x128xf32>
    %8 = tpu.matmul %5, %7, %cst_4 {dimension_numbers = #tpu.dot_dimension_numbers<[1], [0], [0], [1], [0, 0, 1, 1], [], []>} : vector<1x2048xf32>, vector<2048x128xf32>, vector<1x128xf32> -> vector<1x128xf32>
    %c0_5 = arith.constant 0 : index
    %c0_6 = arith.constant 0 : index
    %9 = vector.load %arg3[%c0_5, %c0_6] : memref<1x128xf32, #tpu.memory_space<vmem>>, vector<1x128xf32>
    tpu.vector_store %arg3[%c0_5, %c0_6], %8 {strides = array<i32>} : memref<1x128xf32, #tpu.memory_space<vmem>>, vector<1x128xf32>,
    return
  }
  func.func @transform_0(%arg0: i32) -> (i32, i32) {
    %c0_i32 = arith.constant 0 : i32
    %c0_i32_0 = arith.constant 0 : i32
    %c0_i32_1 = arith.constant 0 : i32
    return %c0_i32, %c0_i32_0 : i32, i32
  }
  func.func @transform_1(%arg0: i32) -> (i32, i32) {
    %c0_i32 = arith.constant 0 : i32
    %c0_i32_0 = arith.constant 0 : i32
    %c0_i32_1 = arith.constant 0 : i32
    return %c0_i32, %c0_i32_0 : i32, i32
  }
  func.func @transform_2(%arg0: i32) -> (i32, i32) {
    %c0_i32 = arith.constant 0 : i32
    %c0_i32_0 = arith.constant 0 : i32
    %c0_i32_1 = arith.constant 0 : i32
    return %c0_i32, %c0_i32_0 : i32, i32
  }
}

</mosaic_0001>

<bundles_post_ra>
// kernel: dcgan_d_nobn_forward.3
= control target key start
LH: loop header
LB: loop body
LE: loop exit
PB: predicated region body
PF: predicated region fallthrough
CT: control target
= control target key end

     0   :  { %vm46_vm0 = vsmask.f32 3328  ;;  %vm47_vm1 = vsmask.f32 7440  ;;  %vm306_vm2 = vcmask 130048   ;;  %s2185_s1 = inlined_call_operand.vmem [shape: bf16[4,16,128], index: 1, kind: input, shape index: {}]   ;;  %s2186_s0 = inlined_call_operand.vmem [shape: bf16[2,9,9,16], index: 0, kind: input, shape index: {}]   ;;  %s2187_s2 = inlined_call_operand.vmem [shape: bf16[128,128], index: 2, kind: output, shape index: {}]  }
   0x1   :  { %v1697_v0 = vld [vmem:[%s2185_s1 + $0x10] sm:$0xff]   ;;  %v1699_v2 = vld [vmem:[%s2186_s0 + $0x18] ss:$8 sps:$4 sm:$0xff]   ;;  %v1700_v3 = vld [vmem:[%s2185_s1 + $0x8] sm:$0xff]  }
   0x2   :  { %v1698_v1 = vld [vmem:[%s2186_s0 + $0x8] ss:$8 sps:$4 sm:$0xff]   ;;  %1613 = vmatprep.subr.bf16.mxu0 %v1697_v0  ;;  %v1748_v4 = vld [vmem:[%s2186_s0] sm:$0xf]  ;;  %v30_v6 = vld [vmem:[%s2186_s0 + $0x4] sm:$0x1]  ;;  %1577 = vmatprep.subr.bf16.mxu1 %v1700_v3 }
   0x3   :  { %1614 = vmatpush3.bf16.msra.mxu0 %v1697_v0  ;;  %1615 = vmatprep.mubr.msk.bf16.mxu0 %vm306_vm2, %v1698_v1  ;;  %v1753_v5 = vld [vmem:[%s2186_s0 + $0x8] sm:$0xf]  ;;  %v31_v7 = vld [vmem:[%s2186_s0 + $0xc] sm:$0x1]  ;;  %v50_v8 = vshrl.u32 %v1748_v4, 16  ;;  %v53_v9 = vshll.u32 %v1748_v4, 16  ;;  %vm1790_vm3 = vmor %vm46_vm0, %vm47_vm1 }
   0x4   :  { %v59_v10 = vshll.u32 %v30_v6, 16  ;;  %v64_v11 = vshrl.u32 %v1753_v5, 16  ;;  %1578 = vmatpush3.bf16.msra.mxu1 %v1700_v3  ;;  %v67_v12 = vshll.u32 %v1753_v5, 16  ;;  %v73_v13 = vshll.u32 %v31_v7, 16  ;;  %v1769_v18 = vld [vmem:[%s2185_s1] sm:$0xff]   ;;  %v1702_v19 = vld [vmem:[%s2185_s1 + $0x18] sm:$0xff]  }
   0x5   :  { %v52_v14 = vrot.slane %v50_v8, 4  ;;  %v55_v15 = vrot.slane %v53_v9, 5  ;;  %1595 = vmatprep.subr.bf16.mxu1 %v1769_v18  ;;  %1631 = vmatprep.subr.bf16.mxu0 %v1702_v19  ;;  %v1778_v23 = vld [vmem:[%s2186_s0 + $0x10] sm:$0xf]  ;;  %v1783_v24 = vld [vmem:[%s2186_s0 + $0x18] sm:$0xf] }
   0x6   :  { %1616 = vmatmul.mubr.msk.bf16.vlgmr.msra.gmra.mrb[0].mxu0 %vm306_vm2, %v1699_v2  ;;  %v61_v16 = vrot.slane %v59_v10, 5  ;;  %v66_v17 = vrot.slane %v64_v11, 4  ;;  %v69_v20 = vrot.slane %v67_v12, 5  ;;  %v75_v21 = vrot.slane %v73_v13, 5  ;;  %v32_v25 = vld [vmem:[%s2186_s0 + $0x14] sm:$0x1] }
   0x7   :  { %v56_v22 = vor.u32 %v55_v15, %v52_v14  ;;  %v33_v28 = vld [vmem:[%s2186_s0 + $0x1c] sm:$0x1]  ;;  %v78_v29 = vshrl.u32 %v1778_v23, 16  ;;  %v81_v30 = vshll.u32 %v1778_v23, 16  ;;  %v87_v31 = vshll.u32 %v32_v25, 16  ;;  %1632 = vmatpush3.bf16.msra.mxu0 %v1702_v19 }
   0x8   :  { %v70_v27 = vor.u32 %v69_v20, %v66_v17  ;;  %v92_v33 = vshrl.u32 %v1783_v24, 16  ;;  %v95_v34 = vshll.u32 %v1783_v24, 16  ;;  %v101_v35 = vshll.u32 %v33_v28, 16  ;;  %v1703_v44 = vld [vmem:[%s2186_s0 + $0x28] ss:$8 sps:$4 sm:$0xff]  }
   0x9   :  { %v57_v32 = vrot.slane %v56_v22, 4  ;;  %v80_v37 = vrot.slane %v78_v29, 4  ;;  %v83_v38 = vrot.slane %v81_v30, 5  ;;  %v89_v39 = vrot.slane %v87_v31, 5  ;;  %v1704_v47 = vld [vmem:[%s2186_s0 + $0x38] ss:$8 sps:$4 sm:$0xff]   ;;  %1619 = vmatprep.mubr.msk.bf16.mxu0 %vm306_vm2, %v1703_v44 }
   0xa   :  { %v71_v36 = vrot.slane %v70_v27, 4  ;;  %v94_v41 = vrot.slane %v92_v33, 4  ;;  %v97_v42 = vrot.slane %v95_v34, 5  ;;  %v103_v43 = vrot.slane %v101_v35, 5  ;;  %v1815_v50 = vld [vmem:[%s2186_s0 + $0x20] sm:$0xf] }
   0xb   :  { %v62_v40 = vsel %vm1790_vm3, %v57_v32, %v61_v16  ;;  %v84_v46 = vor.u32 %v83_v38, %v80_v37  ;;  %v1820_v51 = vld [vmem:[%s2186_s0 + $0x28] sm:$0xf]  ;;  %v34_v52 = vld [vmem:[%s2186_s0 + $0x24] sm:$0x1]  ;;  %v35_v54 = vld [vmem:[%s2186_s0 + $0x2c] sm:$0x1] }
   0xc   :  { %v76_v45 = vsel %vm1790_vm3, %v71_v36, %v75_v21  ;;  %v98_v49 = vor.u32 %v97_v42, %v94_v41  ;;  %v106_v55 = vshrl.u32 %v1815_v50, 16  ;;  %v109_v56 = vshll.u32 %v1815_v50, 16  ;;  %v1837_v62 = vld [vmem:[%s2186_s0 + $0x30] sm:$0xf]  ;;  %v1844_v3 = vld [vmem:[%s2186_s0 + $0x38] sm:$0xf] }
   0xd   :  { %v1342_v48 = vcombine.low %v62_v40, %v76_v45  ;;  %v85_v53 = vrot.slane %v84_v46, 4  ;;  %v115_v57 = vshll.u32 %v34_v52, 16  ;;  %v120_v59 = vshrl.u32 %v1820_v51, 16  ;;  %v36_v10 = vld [vmem:[%s2186_s0 + $0x34] sm:$0x1] }
   0xe   :  { %1620 = vmatmul.mubr.msk.bf16.gmra.mrb[4].mxu0 %vm306_vm2, %v1704_v47  ;;  %v99_v58 = vrot.slane %v98_v49, 4  ;;  %v123_v60 = vshll.u32 %v1820_v51, 16  ;;  %v129_v61 = vshll.u32 %v35_v54, 16  ;;  %v108_v0 = vrot.slane %v106_v55, 4  ;;  %v37_v13 = vld [vmem:[%s2186_s0 + $0x3c] sm:$0x1] }
   0xf   :  { %1579 = vmatprep.mubr.msk.bf16.mxu1 %vm306_vm2, %v1342_v48  ;;  %v90_v63 = vsel %vm1790_vm3, %v85_v53, %v89_v39  ;;  %v111_v1 = vrot.slane %v109_v56, 5  ;;  %v117_v2 = vrot.slane %v115_v57, 5  ;;  %v122_v7 = vrot.slane %v120_v59, 4  ;;  %v1705_v28 = vld [vmem:[%s2186_s0 + $0x50] ss:$8 sps:$4 sm:$0xff]  }
  0x10   :  { %v104_v6 = vsel %vm1790_vm3, %v99_v58, %v103_v43  ;;  %v125_v8 = vrot.slane %v123_v60, 5  ;;  %v131_v9 = vrot.slane %v129_v61, 5  ;;  %v134_v14 = vshrl.u32 %v1837_v62, 16  ;;  %1623 = vmatprep.mubr.msk.bf16.mxu0 %vm306_vm2, %v1705_v28  ;;  %v1706_v36 = vld [vmem:[%s2186_s0 + $0x60] ss:$8 sps:$4 sm:$0xff]  }
  0x11   :  { %v1343_v11 = vcombine.low %v90_v63, %v104_v6  ;;  %v112_v12 = vor.u32 %v111_v1, %v108_v0  ;;  %v137_v15 = vshll.u32 %v1837_v62, 16  ;;  %v143_v17 = vshll.u32 %v36_v10, 16  ;;  %v1879_v39 = vld [vmem:[%s2186_s0 + $0x50] sm:$0xf]  ;;  %v38_v40 = vld [vmem:[%s2186_s0 + $0x4c] sm:$0x1] }
  0x12   :  { %v126_v16 = vor.u32 %v125_v8, %v122_v7  ;;  %v148_v19 = vshrl.u32 %v1844_v3, 16  ;;  %v151_v20 = vshll.u32 %v1844_v3, 16  ;;  %v136_v22 = vrot.slane %v134_v14, 4  ;;  %v39_v45 = vld [vmem:[%s2186_s0 + $0x54] sm:$0x1] }
  0x13   :  { %1580 = vmatmul.mubr.msk.bf16.vlgmr.msra.gmra.mrb[0].mxu1 %vm306_vm2, %v1343_v11  ;;  %v113_v21 = vrot.slane %v112_v12, 4  ;;  %v139_v25 = vrot.slane %v137_v15, 5  ;;  %v157_v27 = vshll.u32 %v37_v13, 16  ;;  %v145_v34 = vrot.slane %v143_v17, 5  ;;  %v1899_v54 = vld [vmem:[%s2186_s0 + $0x58] sm:$0xf] }
  0x14   :  { %1596 = vmatpush3.bf16.msra.mxu1 %v1769_v18  ;;  %v127_v29 = vrot.slane %v126_v16, 4  ;;  %v150_v30 = vrot.slane %v148_v19, 4  ;;  %v153_v31 = vrot.slane %v151_v20, 5  ;;  %v1874_v18 = vld [vmem:[%s2186_s0 + $0x48] sm:$0xf]  ;;  %v1359_v41 = vcombine.low %v1748_v4, %v1753_v5 }
  0x15   :  { %v118_v32 = vsel %vm1790_vm3, %v113_v21, %v117_v2  ;;  %v140_v33 = vor.u32 %v139_v25, %v136_v22  ;;  %v159_v35 = vrot.slane %v157_v27, 5  ;;  %v1360_v42 = vcombine.low %v1778_v23, %v1783_v24  ;;  %v1907_v59 = vld [vmem:[%s2186_s0 + $0x60] sm:$0xf]  ;;  %v40_v1 = vld [vmem:[%s2186_s0 + $0x5c] sm:$0x1] }
  0x16   :  { %v132_v37 = vsel %vm1790_vm3, %v127_v29, %v131_v9  ;;  %v154_v38 = vor.u32 %v153_v31, %v150_v30  ;;  %1624 = vmatmul.mubr.msk.bf16.gmra.mrb[8].mxu0 %vm306_vm2, %v1706_v36  ;;  %v162_v46 = vshrl.u32 %v1874_v18, 16  ;;  %v165_v47 = vshll.u32 %v1874_v18, 16  ;;  %v41_v8 = vld [vmem:[%s2186_s0 + $0x64] sm:$0x1]  ;;  %v1707_v19 = vld [vmem:[%s2186_s0 + $0x70] ss:$8 sps:$4 sm:$0xff]  }
  0x17   :  { %v1344_v43 = vcombine.low %v118_v32, %v132_v37  ;;  %v141_v44 = vrot.slane %v140_v33, 4  ;;  %v171_v49 = vshll.u32 %v38_v40, 16  ;;  %v176_v52 = vshrl.u32 %v1879_v39, 16  ;;  %1627 = vmatprep.mubr.msk.bf16.mxu0 %vm306_vm2, %v1707_v19  ;;  %v1708_v30 = vld [vmem:[%s2186_s0 + $0x80] ss:$8 sps:$4 sm:$0xff]  }
  0x18   :  { %v155_v48 = vrot.slane %v154_v38, 4  ;;  %v179_v53 = vshll.u32 %v1879_v39, 16  ;;  %v164_v56 = vrot.slane %v162_v46, 4  ;;  %v167_v57 = vrot.slane %v165_v47, 5  ;;  %v42_v36 = vld [vmem:[%s2186_s0 + $0x6c] sm:$0x1] }
  0x19   :  { %1583 = vmatprep.mubr.msk.bf16.mxu1 %vm306_vm2, %v1344_v43  ;;  %v146_v55 = vsel %vm1790_vm3, %v141_v44, %v145_v34  ;;  %v185_v58 = vshll.u32 %v39_v45, 16  ;;  %v173_v61 = vrot.slane %v171_v49, 5  ;;  %v178_v63 = vrot.slane %v176_v52, 4  ;;  %v1938_v34 = vld [vmem:[%s2186_s0 + $0x68] sm:$0xf] }
  0x1a   :  { %v160_v60 = vsel %vm1790_vm3, %v155_v48, %v159_v35  ;;  %v181_v0 = vrot.slane %v179_v53, 5  ;;  %v168_v6 = vor.u32 %v167_v57, %v164_v56  ;;  %v190_v9 = vshrl.u32 %v1899_v54, 16  ;;  %v1943_v35 = vld [vmem:[%s2186_s0 + $0x70] sm:$0xf]  ;;  %v43_v44 = vld [vmem:[%s2186_s0 + $0x74] sm:$0x1] }
  0x1b   :  { %v1345_v2 = vcombine.low %v146_v55, %v160_v60  ;;  %v187_v7 = vrot.slane %v185_v58, 5  ;;  %v193_v11 = vshll.u32 %v1899_v54, 16  ;;  %v199_v12 = vshll.u32 %v40_v1, 16  ;;  %v1963_v53 = vld [vmem:[%s2186_s0 + $0x78] sm:$0xf] }
  0x1c   :  { %v182_v10 = vor.u32 %v181_v0, %v178_v63  ;;  %v204_v13 = vshrl.u32 %v1907_v59, 16  ;;  %v169_v14 = vrot.slane %v168_v6, 4  ;;  %v192_v15 = vrot.slane %v190_v9, 4  ;;  %v44_v60 = vld [vmem:[%s2186_s0 + $0x7c] sm:$0x1] }
  0x1d   :  { %1584 = vmatmul.mubr.msk.bf16.gmra.mrb[4].mxu1 %vm306_vm2, %v1345_v2  ;;  %v207_v16 = vshll.u32 %v1907_v59, 16  ;;  %v213_v17 = vshll.u32 %v41_v8, 16  ;;  %v195_v21 = vrot.slane %v193_v11, 5  ;;  %v201_v22 = vrot.slane %v199_v12, 5  ;;  %v1974_v2 = vld [vmem:[%s2186_s0 + $0x80] sm:$0xf] }
  0x1e   :  { %v183_v20 = vrot.slane %v182_v10, 4  ;;  %v206_v25 = vrot.slane %v204_v13, 4  ;;  %v174_v27 = vsel %vm1790_vm3, %v169_v14, %v173_v61  ;;  %v1361_v31 = vcombine.low %v1815_v50, %v1820_v51  ;;  %1628 = vmatmul.mubr.msk.bf16.gmra.mrb[12].mxu0 %vm306_vm2, %v1708_v30  ;;  %v45_v9 = vld [vmem:[%s2186_s0 + $0x84] sm:$0x1]  ;;  %v1424_v5 = vld [vmem:[%s2186_s0 + $0x3c] sm:$0x1] }
  0x1f   :  { %v209_v28 = vrot.slane %v207_v16, 5  ;;  %v215_v29 = vrot.slane %v213_v17, 5  ;;  %v196_v33 = vor.u32 %v195_v21, %v192_v15  ;;  %v1362_v37 = vcombine.low %v1837_v62, %v1844_v3  ;;  %v1411_v15 = vld [vmem:[%s2186_s0 + $0x8] sm:$0xf]  ;;  %v1429_v23 = vld [vmem:[%s2186_s0 + $0x58] sm:$0xf] }
  0x20   :  { %v188_v32 = vsel %vm1790_vm3, %v183_v20, %v187_v7  ;;  %v1363_v38 = vcombine.low %v1874_v18, %v1879_v39  ;;  %v218_v45 = vshrl.u32 %v1938_v34, 16  ;;  %v221_v46 = vshll.u32 %v1938_v34, 16  ;;  %v1430_v50 = vld [vmem:[%s2186_s0 + $0x5c] sm:$0x1]  ;;  %v1436_v62 = vld [vmem:[%s2186_s0 + $0x74] sm:$0x1] }
  0x21   :  { %v1346_v40 = vcombine.low %v174_v27, %v188_v32  ;;  %v210_v43 = vor.u32 %v209_v28, %v206_v25  ;;  %v197_v47 = vrot.slane %v196_v33, 4  ;;  %v227_v48 = vshll.u32 %v42_v36, 16  ;;  %v1412_v28 = vld [vmem:[%s2186_s0 + $0xc] sm:$0x1]  ;;  %v1413_v33 = vld [vmem:[%s2186_s0 + $0x10] sm:$0xf] }
  0x22   :  { %v232_v49 = vshrl.u32 %v1943_v35, 16  ;;  %v235_v52 = vshll.u32 %v1943_v35, 16  ;;  %v220_v56 = vrot.slane %v218_v45, 4  ;;  %v223_v57 = vrot.slane %v221_v46, 5  ;;  %v1414_v45 = vld [vmem:[%s2186_s0 + $0x14] sm:$0x1] }
  0x23   :  { %1587 = vmatprep.mubr.msk.bf16.mxu1 %vm306_vm2, %v1346_v40  ;;  %v211_v55 = vrot.slane %v210_v43, 4  ;;  %v241_v58 = vshll.u32 %v43_v44, 16  ;;  %v202_v61 = vsel %vm1790_vm3, %v197_v47, %v201_v22  ;;  %v229_v63 = vrot.slane %v227_v48, 5  ;;  %v1415_v47 = vld [vmem:[%s2186_s0 + $0x18] sm:$0xf] }
  0x24   :  { %v234_v0 = vrot.slane %v232_v49, 4  ;;  %v237_v1 = vrot.slane %v235_v52, 5  ;;  %v224_v7 = vor.u32 %v223_v57, %v220_v56  ;;  %v246_v10 = vshrl.u32 %v1963_v53, 16 }
  0x25   :  { %v216_v6 = vsel %vm1790_vm3, %v211_v55, %v215_v29  ;;  %v243_v8 = vrot.slane %v241_v58, 5  ;;  %v249_v13 = vshll.u32 %v1963_v53, 16  ;;  %v255_v14 = vshll.u32 %v44_v60, 16 }
  0x26   :  { %v1347_v11 = vcombine.low %v202_v61, %v216_v6  ;;  %v238_v12 = vor.u32 %v237_v1, %v234_v0  ;;  %v225_v16 = vrot.slane %v224_v7, 4  ;;  %v248_v17 = vrot.slane %v246_v10, 4  ;;  %v1416_v1 = vld [vmem:[%s2186_s0 + $0x1c] sm:$0x1] }
  0x27   :  { %v260_v19 = vshrl.u32 %v1974_v2, 16  ;;  %v263_v20 = vshll.u32 %v1974_v2, 16  ;;  %v251_v22 = vrot.slane %v249_v13, 5  ;;  %v257_v25 = vrot.slane %v255_v14, 5 }
  0x28   :  { %1588 = vmatmul.mubr.msk.bf16.gmra.mrb[8].mxu1 %vm306_vm2, %v1347_v11  ;;  %v239_v21 = vrot.slane %v238_v12, 4  ;;  %v269_v27 = vshll.u32 %v45_v9, 16  ;;  %v230_v29 = vsel %vm1790_vm3, %v225_v16, %v229_v63  ;;  %v831_v36 = vshrl.u32 %v1411_v15, 16  ;;  %v1417_v11 = vld [vmem:[%s2186_s0 + $0x20] sm:$0xf] }
  0x29   :  { %v262_v30 = vrot.slane %v260_v19, 4  ;;  %v265_v32 = vrot.slane %v263_v20, 5  ;;  %v252_v43 = vor.u32 %v251_v22, %v248_v17  ;;  %v834_v46 = vshll.u32 %v1411_v15, 16  ;;  %v1418_v12 = vld [vmem:[%s2186_s0 + $0x24] sm:$0x1] }
  0x2a   :  { %v244_v40 = vsel %vm1790_vm3, %v239_v21, %v243_v8  ;;  %v271_v44 = vrot.slane %v269_v27, 5  ;;  %v833_v52 = vrot.slane %v831_v36, 4  ;;  %v840_v55 = vshll.u32 %v1412_v28, 16  ;;  %v1419_v17 = vld [vmem:[%s2186_s0 + $0x28] sm:$0xf] }
  0x2b   :  { %v1348_v48 = vcombine.low %v230_v29, %v244_v40  ;;  %v266_v49 = vor.u32 %v265_v32, %v262_v30  ;;  %v253_v56 = vrot.slane %v252_v43, 4  ;;  %v836_v57 = vrot.slane %v834_v46, 5  ;;  %v1420_v30 = vld [vmem:[%s2186_s0 + $0x2c] sm:$0x1]  ;;  %v1421_v40 = vld [vmem:[%s2186_s0 + $0x30] sm:$0xf] }
  0x2c   :  { %v845_v58 = vshrl.u32 %v1413_v33, 16  ;;  %v848_v60 = vshll.u32 %v1413_v33, 16  ;;  %v842_v63 = vrot.slane %v840_v55, 5  ;;  %v854_v0 = vshll.u32 %v1414_v45, 16 }
  0x2d   :  { %1591 = vmatprep.mubr.msk.bf16.mxu1 %vm306_vm2, %v1348_v48  ;;  %v267_v61 = vrot.slane %v266_v49, 4  ;;  %v859_v6 = vshrl.u32 %v1415_v47, 16  ;;  %v258_v7 = vsel %vm1790_vm3, %v253_v56, %v257_v25  ;;  %v837_v8 = vor.u32 %v836_v57, %v833_v52  ;;  %v1422_v48 = vld [vmem:[%s2186_s0 + $0x34] sm:$0x1]  ;;  %v1423_v57 = vld [vmem:[%s2186_s0 + $0x38] sm:$0xf] }
  0x2e   :  { %v847_v9 = vrot.slane %v845_v58, 4  ;;  %v850_v10 = vrot.slane %v848_v60, 5  ;;  %v856_v14 = vrot.slane %v854_v0, 5  ;;  %v862_v16 = vshll.u32 %v1415_v47, 16 }
  0x2f   :  { %v272_v13 = vsel %vm1790_vm3, %v267_v61, %v271_v44  ;;  %v861_v15 = vrot.slane %v859_v6, 4  ;;  %v838_v20 = vrot.slane %v837_v8, 4  ;;  %v868_v22 = vshll.u32 %v1416_v1, 16  ;;  %v1425_v6 = vld [vmem:[%s2186_s0 + $0x40] sm:$0xf] }
  0x30   :  { %v1349_v19 = vcombine.low %v258_v7, %v272_v13  ;;  %v851_v21 = vor.u32 %v850_v10, %v847_v9  ;;  %v864_v25 = vrot.slane %v862_v16, 5  ;;  %v873_v27 = vshrl.u32 %v1417_v11, 16 }
  0x31   :  { %v876_v28 = vshll.u32 %v1417_v11, 16  ;;  %v882_v29 = vshll.u32 %v1418_v12, 16  ;;  %v843_v32 = vsel %vm1790_vm3, %v838_v20, %v842_v63  ;;  %v870_v36 = vrot.slane %v868_v22, 5 }
  0x32   :  { %1592 = vmatmul.mubr.msk.bf16.gmra.mrb[12].mxu1 %vm306_vm2, %v1349_v19  ;;  %v852_v33 = vrot.slane %v851_v21, 4  ;;  %v887_v43 = vshrl.u32 %v1419_v17, 16  ;;  %v865_v44 = vor.u32 %v864_v25, %v861_v15  ;;  %v875_v45 = vrot.slane %v873_v27, 4  ;;  %v1427_v21 = vld [vmem:[%s2186_s0 + $0x50] sm:$0xf] }
  0x33   :  { %v878_v46 = vrot.slane %v876_v28, 5  ;;  %v884_v47 = vrot.slane %v882_v29, 5  ;;  %1597 = vmatprep.mubr.msk.bf16.mxu1 %vm306_vm2, %v1359_v41  ;;  %v890_v55 = vshll.u32 %v1419_v17, 16  ;;  %v896_v56 = vshll.u32 %v1420_v30, 16  ;;  %v1428_v29 = vld [vmem:[%s2186_s0 + $0x54] sm:$0x1] }
  0x34   :  { %v857_v49 = vsel %vm1790_vm3, %v852_v33, %v856_v14  ;;  %v889_v52 = vrot.slane %v887_v43, 4  ;;  %v866_v60 = vrot.slane %v865_v44, 4  ;;  %v901_v4 = vshrl.u32 %v1421_v40, 16  ;;  %v1426_v14 = vld [vmem:[%s2186_s0 + $0x44] sm:$0x1] }
  0x35   :  { %v1445_v58 = vcombine.low %v843_v32, %v857_v49  ;;  %v879_v61 = vor.u32 %v878_v46, %v875_v45  ;;  %v892_v41 = vrot.slane %v890_v55, 5  ;;  %v898_v63 = vrot.slane %v896_v56, 5 }
  0x36   :  { %v904_v0 = vshll.u32 %v1421_v40, 16  ;;  %v910_v1 = vshll.u32 %v1422_v48, 16  ;;  %v871_v7 = vsel %vm1790_vm3, %v866_v60, %v870_v36  ;;  %v903_v9 = vrot.slane %v901_v4, 4  ;;  %v1432_v60 = vld [vmem:[%s2186_s0 + $0x64] sm:$0x1] }
  0x37   :  { %1633 = vmatprep.mubr.msk.bf16.mxu0 %vm306_vm2, %v1445_v58  ;;  %v880_v8 = vrot.slane %v879_v61, 4  ;;  %v915_v10 = vshrl.u32 %v1423_v57, 16  ;;  %v893_v11 = vor.u32 %v892_v41, %v889_v52  ;;  %v918_v15 = vshll.u32 %v1423_v57, 16  ;;  %v1431_v52 = vld [vmem:[%s2186_s0 + $0x60] sm:$0xf] }
  0x38   :  { %v906_v12 = vrot.slane %v904_v0, 5  ;;  %v912_v13 = vrot.slane %v910_v1, 5  ;;  %v924_v19 = vshll.u32 %v1424_v5, 16  ;;  %v929_v20 = vshrl.u32 %v1425_v6, 16  ;;  %v1433_v61 = vld [vmem:[%s2186_s0 + $0x68] sm:$0xf] }
  0x39   :  { %v885_v16 = vsel %vm1790_vm3, %v880_v8, %v884_v47  ;;  %v917_v17 = vrot.slane %v915_v10, 4  ;;  %v894_v25 = vrot.slane %v893_v11, 4  ;;  %v920_v28 = vrot.slane %v918_v15, 5 }
  0x3a   :  { %v1446_v22 = vcombine.low %v871_v7, %v885_v16  ;;  %1598 = vmatmul.mubr.msk.bf16.vlgmr.msra.gmra.mrb[0].mxu1 %vm306_vm2, %v1360_v42  ;;  %v907_v27 = vor.u32 %v906_v12, %v903_v9  ;;  %v926_v30 = vrot.slane %v924_v19, 5  ;;  %v931_v32 = vrot.slane %v929_v20, 4  ;;  %v1437_v19 = vld [vmem:[%s2186_s0 + $0x78] sm:$0xf] }
  0x3b   :  { %v932_v33 = vshll.u32 %v1425_v6, 16  ;;  %v938_v36 = vshll.u32 %v1426_v14, 16  ;;  %1601 = vmatprep.mubr.msk.bf16.mxu1 %vm306_vm2, %v1361_v31  ;;  %v899_v24 = vsel %vm1790_vm3, %v894_v25, %v898_v63  ;;  %v921_v40 = vor.u32 %v920_v28, %v917_v17  ;;  %v1434_v6 = vld [vmem:[%s2186_s0 + $0x6c] sm:$0x1] }
  0x3c   :  { %1634 = vmatmul.mubr.msk.bf16.vlgmr.msra.gmra.mrb[0].mxu0 %vm306_vm2, %v1446_v22  ;;  %v908_v42 = vrot.slane %v907_v27, 4  ;;  %v943_v43 = vshrl.u32 %v1427_v21, 16  ;;  %v946_v51 = vshll.u32 %v1427_v21, 16  ;;  %v952_v31 = vshll.u32 %v1428_v29, 16 }
  0x3d   :  { %v934_v44 = vrot.slane %v932_v33, 5  ;;  %v940_v45 = vrot.slane %v938_v36, 5  ;;  %v922_v47 = vrot.slane %v921_v40, 4  ;;  %v957_v49 = vshrl.u32 %v1429_v23, 16  ;;  %v1439_v36 = vld [vmem:[%s2186_s0 + $0x80] sm:$0xf] }
  0x3e   :  { %v913_v46 = vsel %vm1790_vm3, %v908_v42, %v912_v13  ;;  %v945_v48 = vrot.slane %v943_v43, 4  ;;  %v948_v57 = vrot.slane %v946_v51, 5  ;;  %v954_v58 = vrot.slane %v952_v31, 5  ;;  %v1435_v13 = vld [vmem:[%s2186_s0 + $0x70] sm:$0xf] }
  0x3f   :  { %v1447_v55 = vcombine.low %v899_v24, %v913_v46  ;;  %v935_v56 = vor.u32 %v934_v44, %v931_v32  ;;  %v927_v4 = vsel %vm1790_vm3, %v922_v47, %v926_v30  ;;  %v959_v5 = vrot.slane %v957_v49, 4  ;;  %v1441_v43 = vld [vmem:[%s2186_s0 + $0x88] sm:$0xf]  ;;  %v1440_v31 = vld [vmem:[%s2186_s0 + $0x84] sm:$0x1] }
  0x40   :  { %v960_v41 = vshll.u32 %v1429_v23, 16  ;;  %v966_v63 = vshll.u32 %v1430_v50, 16  ;;  %v949_v1 = vor.u32 %v948_v57, %v945_v48  ;;  %v971_v7 = vshrl.u32 %v1431_v52, 16 }
  0x41   :  { %1637 = vmatprep.mubr.msk.bf16.mxu0 %vm306_vm2, %v1447_v55  ;;  %v936_v0 = vrot.slane %v935_v56, 4  ;;  %v974_v8 = vshll.u32 %v1431_v52, 16  ;;  %v980_v10 = vshll.u32 %v1432_v60, 16  ;;  %v985_v11 = vshrl.u32 %v1433_v61, 16 }
  0x42   :  { %1602 = vmatmul.mubr.msk.bf16.gmra.mrb[4].mxu1 %vm306_vm2, %v1362_v37  ;;  %v962_v9 = vrot.slane %v960_v41, 5  ;;  %v1364_v12 = vcombine.low %v1899_v54, %v1907_v59  ;;  %v950_v15 = vrot.slane %v949_v1, 4  ;;  %v973_v16 = vrot.slane %v971_v7, 4 }
  0x43   :  { %v941_v14 = vsel %vm1790_vm3, %v936_v0, %v940_v45  ;;  %v976_v17 = vrot.slane %v974_v8, 5  ;;  %1605 = vmatprep.mubr.msk.bf16.mxu1 %vm306_vm2, %v1363_v38  ;;  %v968_v59 = vrot.slane %v966_v63, 5  ;;  %v987_v37 = vrot.slane %v985_v11, 4  ;;  %v1438_v38 = vld [vmem:[%s2186_s0 + $0x7c] sm:$0x1] }
  0x44   :  { %v1448_v3 = vcombine.low %v927_v4, %v941_v14  ;;  %v963_v54 = vor.u32 %v962_v9, %v959_v5  ;;  %v955_v20 = vsel %vm1790_vm3, %v950_v15, %v954_v58  ;;  %v988_v22 = vshll.u32 %v1433_v61, 16  ;;  %v1442_v61 = vld [vmem:[%s2186_s0 + $0x8c] sm:$0x1] }
  0x45   :  { %v977_v21 = vor.u32 %v976_v17, %v973_v16  ;;  %v994_v18 = vshll.u32 %v1434_v6, 16  ;;  %v999_v25 = vshrl.u32 %v1435_v13, 16  ;;  %v1002_v27 = vshll.u32 %v1435_v13, 16 }
  0x46   :  { %1638 = vmatmul.mubr.msk.bf16.gmra.mrb[4].mxu0 %vm306_vm2, %v1448_v3  ;;  %v964_v39 = vrot.slane %v963_v54, 4  ;;  %v1008_v28 = vshll.u32 %v1436_v62, 16  ;;  %v982_v30 = vrot.slane %v980_v10, 5  ;;  %v990_v32 = vrot.slane %v988_v22, 5 }
  0x47   :  { %v978_v29 = vrot.slane %v977_v21, 4  ;;  %v1013_v33 = vshrl.u32 %v1437_v19, 16  ;;  %v996_v24 = vrot.slane %v994_v18, 5  ;;  %v1001_v42 = vrot.slane %v999_v25, 4 }
  0x48   :  { %v969_v23 = vsel %vm1790_vm3, %v964_v39, %v968_v59  ;;  %v1004_v40 = vrot.slane %v1002_v27, 5  ;;  %v991_v45 = vor.u32 %v990_v32, %v987_v37  ;;  %v1010_v50 = vrot.slane %v1008_v28, 5 }
  0x49   :  { %v1449_v44 = vcombine.low %v955_v20, %v969_v23  ;;  %v1015_v51 = vrot.slane %v1013_v33, 4  ;;  %v1016_v47 = vshll.u32 %v1437_v19, 16  ;;  %v1022_v48 = vshll.u32 %v1438_v38, 16 }
  0x4a   :  { %1606 = vmatmul.mubr.msk.bf16.gmra.mrb[8].mxu1 %vm306_vm2, %v1364_v12  ;;  %v1005_v46 = vor.u32 %v1004_v40, %v1001_v42  ;;  %v1027_v49 = vshrl.u32 %v1439_v36, 16  ;;  %v983_v52 = vsel %vm1790_vm3, %v978_v29, %v982_v30  ;;  %v992_v55 = vrot.slane %v991_v45, 4 }
  0x4b   :  { %1641 = vmatprep.mubr.msk.bf16.mxu0 %vm306_vm2, %v1449_v44  ;;  %v1030_v56 = vshll.u32 %v1439_v36, 16  ;;  %v1041_v57 = vshrl.u32 %v1441_v43, 16  ;;  %v1018_v60 = vrot.slane %v1016_v47, 5  ;;  %v1036_v5 = vshll.u32 %v1440_v31, 16 }
  0x4c   :  { %v1006_v58 = vrot.slane %v1005_v46, 4  ;;  %v1029_v4 = vrot.slane %v1027_v49, 4  ;;  %v997_v41 = vsel %vm1790_vm3, %v992_v55, %v996_v24  ;;  %v1024_v63 = vrot.slane %v1022_v48, 5 }
  0x4d   :  { %v1032_v0 = vrot.slane %v1030_v56, 5  ;;  %v1450_v1 = vcombine.low %v983_v52, %v997_v41  ;;  %v1019_v6 = vor.u32 %v1018_v60, %v1015_v51  ;;  %v1043_v7 = vrot.slane %v1041_v57, 4 }
  0x4e   :  { %v1044_v8 = vshll.u32 %v1441_v43, 16  ;;  %v1050_v10 = vshll.u32 %v1442_v61, 16  ;;  %v1365_v11 = vcombine.low %v1938_v34, %v1943_v35  ;;  %v1366_v12 = vcombine.low %v1963_v53, %v1974_v2 }
  0x4f   :  { %v1033_v9 = vor.u32 %v1032_v0, %v1029_v4  ;;  %1642 = vmatmul.mubr.msk.bf16.gmra.mrb[8].mxu0 %vm306_vm2, %v1450_v1  ;;  %v1011_v13 = vsel %vm1790_vm3, %v1006_v58, %v1010_v50  ;;  %v1020_v14 = vrot.slane %v1019_v6, 4  ;;  %v1038_v15 = vrot.slane %v1036_v5, 5 }
  0x50   :  { %v1046_v16 = vrot.slane %v1044_v8, 5  ;;  %1609 = vmatprep.mubr.msk.bf16.mxu1 %vm306_vm2, %v1365_v11  ;;  %v1052_v54 = vrot.slane %v1050_v10, 5 }
  0x51   :  { %v1034_v17 = vrot.slane %v1033_v9, 4  ;;  %v1025_v62 = vsel %vm1790_vm3, %v1020_v14, %v1024_v63 }
  0x52   :  { %v1047_v3 = vor.u32 %v1046_v16, %v1043_v7  ;;  %1610 = vmatmul.mubr.msk.bf16.gmra.mrb[12].mxu1 %vm306_vm2, %v1366_v12  ;;  %v1451_v34 = vcombine.low %v1011_v13, %v1025_v62 }
  0x53   :  { %v1039_v35 = vsel %vm1790_vm3, %v1034_v17, %v1038_v15 }
  0x54   :  { %v1048_v53 = vrot.slane %v1047_v3, 4  ;;  %1645 = vmatprep.mubr.msk.bf16.mxu0 %vm306_vm2, %v1451_v34 }
  0x56   :  { %v1053_v2 = vsel %vm1790_vm3, %v1048_v53, %v1052_v54 }
  0x57   :  { %v1452_v59 = vcombine.low %v1039_v35, %v1053_v2 }
  0x59   :  { %1646 = vmatmul.mubr.msk.bf16.gmra.mrb[12].mxu0 %vm306_vm2, %v1452_v59 }
 0x10d   :  { %v1599_v37 = vpop.f32.mrb[0].mxu1 }
 0x10e   :  { %v532_v19 = vpop.f32.mrb[1].mxu1 }
 0x10f   :  { %v1635_v20 = vpop.f32.mrb[0].mxu0  ;;  %v1600_v21 = vpop.f32.mrb[2].mxu1 }
 0x110   :  { %v1145_v22 = vpop.f32.mrb[1].mxu0  ;;  %v1649_v18 = vadd.f32 %v1635_v20, %v1599_v37  ;;  %v535_v39 = vpop.f32.mrb[3].mxu1 }
 0x111   :  { %v1636_v38 = vpop.f32.mrb[2].mxu0  ;;  %v1650_v25 = vadd.f32 %v1145_v22, %v532_v19 }
 0x112   :  { %v1148_v27 = vpop.f32.mrb[3].mxu0  ;;  %v1226_v28 = vmul.f32 0.2, %v1649_v18  ;;  %v1651_v29 = vadd.f32 %v1636_v38, %v1600_v21 }
 0x113   :  { %v1224_v30 = vmul.f32 0.2, %v1650_v25  ;;  %v1652_v32 = vadd.f32 %v1148_v27, %v535_v39 }
 0x114   :  { %v1227_v33 = vmul.f32 0.2, %v1651_v29  ;;  %v1242_v23 = vmax.f32 %v1649_v18, %v1226_v28 }
 0x115   :  { %v1225_v26 = vmul.f32 0.2, %v1652_v32  ;;  %v1603_v36 = vpop.f32.mrb[4].mxu1  ;;  %v1240_v40 = vmax.f32 %v1650_v25, %v1224_v30 }
 0x116   :  { %v1243_v24 = vmax.f32 %v1651_v29, %v1227_v33  ;;  %v548_v42 = vpop.f32.mrb[5].mxu1 }
 0x117   :  { %v1241_v43 = vmax.f32 %v1652_v32, %v1225_v26  ;;  %v1604_v44 = vpop.f32.mrb[6].mxu1 }
 0x118   :  { %v1502_v45 = vpack.c.bf16 %v1243_v24, %v1242_v23  ;;  %v551_v50 = vpop.f32.mrb[7].mxu1 }
 0x119   :  { %v1639_v51 = vpop.f32.mrb[4].mxu0  ;;  %v1497_v31 = vpack.c.bf16 %v1241_v43, %v1240_v40 }
 0x11a   :  { %1534 = vst [vmem:[%s2187_s2 + $0x8] sm:$0xff] %v1502_v45   ;;  %v1161_v46 = vpop.f32.mrb[5].mxu0  ;;  %v1653_v47 = vadd.f32 %v1639_v51, %v1603_v36 }
 0x11b   :  { %1498 = vst [vmem:[%s2187_s2] sm:$0xff] %v1497_v31   ;;  %v1640_v48 = vpop.f32.mrb[6].mxu0  ;;  %v1654_v49 = vadd.f32 %v1161_v46, %v548_v42 }
 0x11c   :  { %v1164_v52 = vpop.f32.mrb[7].mxu0  ;;  %v1230_v55 = vmul.f32 0.2, %v1653_v47  ;;  %v1655_v56 = vadd.f32 %v1640_v48, %v1604_v44 }
 0x11d   :  { %v1228_v57 = vmul.f32 0.2, %v1654_v49  ;;  %v1656_v58 = vadd.f32 %v1164_v52, %v551_v50  ;;  %v1607_v60 = vpop.f32.mrb[8].mxu1 }
 0x11e   :  { %v1231_v61 = vmul.f32 0.2, %v1655_v56  ;;  %v564_v4 = vpop.f32.mrb[9].mxu1  ;;  %v1246_v63 = vmax.f32 %v1653_v47, %v1230_v55 }
 0x11f   :  { %v1229_v5 = vmul.f32 0.2, %v1656_v58  ;;  %v1608_v41 = vpop.f32.mrb[10].mxu1  ;;  %v1244_v6 = vmax.f32 %v1654_v49, %v1228_v57 }
 0x120   :  { %v1247_v0 = vmax.f32 %v1655_v56, %v1231_v61  ;;  %v567_v1 = vpop.f32.mrb[11].mxu1 }
 0x121   :  { %v1245_v7 = vmax.f32 %v1656_v58, %v1229_v5 }
 0x122   :  { %v1512_v8 = vpack.c.bf16 %v1247_v0, %v1246_v63  ;;  %v1643_v9 = vpop.f32.mrb[8].mxu0 }
 0x123   :  { %v1507_v10 = vpack.c.bf16 %v1245_v7, %v1244_v6  ;;  %v1177_v11 = vpop.f32.mrb[9].mxu0  ;;  %v1657_v12 = vadd.f32 %v1643_v9, %v1607_v60 }
 0x124   :  { %1536 = vst [vmem:[%s2187_s2 + $0x18] sm:$0xff] %v1512_v8   ;;  %v1644_v13 = vpop.f32.mrb[10].mxu0  ;;  %v1658_v14 = vadd.f32 %v1177_v11, %v564_v4 }
 0x125   :  { %1535 = vst [vmem:[%s2187_s2 + $0x10] sm:$0xff] %v1507_v10   ;;  %v1611_v15 = vpop.f32.mrb[12].mxu1  ;;  %v1180_v16 = vpop.f32.mrb[11].mxu0  ;;  %v1234_v17 = vmul.f32 0.2, %v1657_v12  ;;  %v1659_v62 = vadd.f32 %v1644_v13, %v1608_v41 }
 0x126   :  { %v580_v3 = vpop.f32.mrb[13].mxu1  ;;  %v1232_v54 = vmul.f32 0.2, %v1658_v14  ;;  %v1660_v34 = vadd.f32 %v1180_v16, %v567_v1 }
 0x127   :  { %v1612_v35 = vpop.f32.mrb[14].mxu1  ;;  %v1235_v53 = vmul.f32 0.2, %v1659_v62  ;;  %v1250_v37 = vmax.f32 %v1657_v12, %v1234_v17 }
 0x128   :  { %v583_v2 = vpop.f32.mrb[15].mxu1  ;;  %v1233_v59 = vmul.f32 0.2, %v1660_v34  ;;  %v1248_v20 = vmax.f32 %v1658_v14, %v1232_v54 }
 0x129   :  { %v1251_v19 = vmax.f32 %v1659_v62, %v1235_v53 }
 0x12a   :  { %v1249_v21 = vmax.f32 %v1660_v34, %v1233_v59 }
 0x12b   :  { %v1522_v22 = vpack.c.bf16 %v1251_v19, %v1250_v37 }
 0x12c   :  { %v1647_v18 = vpop.f32.mrb[12].mxu0  ;;  %v1517_v39 = vpack.c.bf16 %v1249_v21, %v1248_v20 }
 0x12d   :  { %v1193_v38 = vpop.f32.mrb[13].mxu0  ;;  %v1661_v25 = vadd.f32 %v1647_v18, %v1611_v15  ;;  %1538 = vst [vmem:[%s2187_s2 + $0x28] sm:$0xff] %v1522_v22  }
 0x12e   :  { %v1648_v27 = vpop.f32.mrb[14].mxu0  ;;  %v1662_v28 = vadd.f32 %v1193_v38, %v580_v3  ;;  %1537 = vst [vmem:[%s2187_s2 + $0x20] sm:$0xff] %v1517_v39  }
 0x12f   :  { %v1196_v29 = vpop.f32.mrb[15].mxu0  ;;  %v1238_v30 = vmul.f32 0.2, %v1661_v25  ;;  %v1663_v32 = vadd.f32 %v1648_v27, %v1612_v35 }
 0x130   :  { %v1236_v33 = vmul.f32 0.2, %v1662_v28  ;;  %v1664_v26 = vadd.f32 %v1196_v29, %v583_v2 }
 0x131   :  { %v1239_v36 = vmul.f32 0.2, %v1663_v32  ;;  %v1254_v24 = vmax.f32 %v1661_v25, %v1238_v30 }
 0x132   :  { %v1237_v23 = vmul.f32 0.2, %v1664_v26  ;;  %v1252_v40 = vmax.f32 %v1662_v28, %v1236_v33 }
 0x133   :  { %v1255_v42 = vmax.f32 %v1663_v32, %v1239_v36 }
 0x134   :  { %v1253_v43 = vmax.f32 %v1664_v26, %v1237_v23 }
 0x135   :  { %v1532_v44 = vpack.c.bf16 %v1255_v42, %v1254_v24 }
 0x136   :  { %v1527_v45 = vpack.c.bf16 %v1253_v43, %v1252_v40 }
 0x137   :  { %1540 = vst [vmem:[%s2187_s2 + $0x38] sm:$0xff] %v1532_v44  }
 0x138   :  { %1539 = vst [vmem:[%s2187_s2 + $0x30] sm:$0xff] %v1527_v45  }

// kernel: dcgan_d_nobn_forward.4
= control target key start
LH: loop header
LB: loop body
LE: loop exit
PB: predicated region body
PF: predicated region fallthrough
CT: control target
= control target key end

     0   :  { %s2684_s1 = inlined_call_operand.vmem [shape: bf16[2048,128], index: 1, kind: input, shape index: {}]   ;;  %s2685_s0 = inlined_call_operand.vmem [shape: bf16[32,2048], index: 0, kind: input, shape index: {}]   ;;  %s2686_s2 = inlined_call_operand.vmem [shape: bf16[32,128], index: 2, kind: output, shape index: {}]  }
   0x1   :  { %v2055_v0 = vld [vmem:[%s2684_s1 + $0x40] sm:$0xff]   ;;  %v2059_v4 = vld [vmem:[%s2684_s1 + $0x48] sm:$0xff]   ;;  %v2063_v8 = vld [vmem:[%s2684_s1 + $0x50] sm:$0xff]  }
   0x2   :  { %v2056_v1 = vld [vmem:[%s2684_s1 + $0xc0] sm:$0xff]   ;;  %1831 = vmatprep.subr.bf16.mxu0 %v2055_v0  ;;  %v2060_v5 = vld [vmem:[%s2684_s1 + $0xc8] sm:$0xff]   ;;  %v2064_v9 = vld [vmem:[%s2684_s1 + $0xd0] sm:$0xff]  }
   0x3   :  { %v2057_v2 = vld [vmem:[%s2684_s1] sm:$0xff]   ;;  %1859 = vmatprep.subr.bf16.mxu1 %v2056_v1  ;;  %v2061_v6 = vld [vmem:[%s2684_s1 + $0x8] sm:$0xff]   ;;  %v2065_v10 = vld [vmem:[%s2684_s1 + $0x10] sm:$0xff]  }
   0x4   :  { %v2058_v3 = vld [vmem:[%s2684_s1 + $0x80] sm:$0xff]   ;;  %1832 = vmatpush3.bf16.msra.mxu0 %v2057_v2  ;;  %v2062_v7 = vld [vmem:[%s2684_s1 + $0x88] sm:$0xff]   ;;  %v2066_v11 = vld [vmem:[%s2684_s1 + $0x90] sm:$0xff]  }
   0x5   :  { %1860 = vmatpush3.bf16.msra.mxu1 %v2058_v3  ;;  %1833 = vmatprep.subr.bf16.mxu0 %v2059_v4  ;;  %v2067_v12 = vld [vmem:[%s2684_s1 + $0x58] sm:$0xff]   ;;  %v2071_v16 = vld [vmem:[%s2684_s1 + $0x60] sm:$0xff]   ;;  %v2075_v20 = vld [vmem:[%s2684_s1 + $0x68] sm:$0xff]  }
   0x6   :  { %1861 = vmatprep.subr.bf16.mxu1 %v2060_v5  ;;  %v2068_v13 = vld [vmem:[%s2684_s1 + $0xd8] sm:$0xff]   ;;  %v2072_v17 = vld [vmem:[%s2684_s1 + $0xe0] sm:$0xff]   ;;  %v2076_v21 = vld [vmem:[%s2684_s1 + $0xe8] sm:$0xff]  }
   0x7   :  { %v2069_v14 = vld [vmem:[%s2684_s1 + $0x18] sm:$0xff]   ;;  %v2073_v18 = vld [vmem:[%s2684_s1 + $0x20] sm:$0xff]   ;;  %v2077_v22 = vld [vmem:[%s2684_s1 + $0x28] sm:$0xff]  }
   0x8   :  { %1834 = vmatpush3.bf16.msra.mxu0 %v2061_v6  ;;  %v2070_v15 = vld [vmem:[%s2684_s1 + $0x98] sm:$0xff]   ;;  %v2074_v19 = vld [vmem:[%s2684_s1 + $0xa0] sm:$0xff]   ;;  %v2078_v23 = vld [vmem:[%s2684_s1 + $0xa8] sm:$0xff]  }
   0x9   :  { %1862 = vmatpush3.bf16.msra.mxu1 %v2062_v7  ;;  %1835 = vmatprep.subr.bf16.mxu0 %v2063_v8  ;;  %v2079_v24 = vld [vmem:[%s2684_s1 + $0x70] sm:$0xff]   ;;  %v2083_v28 = vld [vmem:[%s2684_s1 + $0x78] sm:$0xff]   ;;  %v12_v32 = vld [vmem:[%s2685_s0] sm:$0xff] }
   0xa   :  { %1863 = vmatprep.subr.bf16.mxu1 %v2064_v9  ;;  %v2080_v25 = vld [vmem:[%s2684_s1 + $0xf0] sm:$0xff]   ;;  %v2084_v29 = vld [vmem:[%s2684_s1 + $0xf8] sm:$0xff]   ;;  %v20_v33 = vld [vmem:[%s2685_s0 + $0x40] sm:$0xff] }
   0xb   :  { %v2081_v26 = vld [vmem:[%s2684_s1 + $0x30] sm:$0xff]   ;;  %v2085_v30 = vld [vmem:[%s2684_s1 + $0x38] sm:$0xff]   ;;  %v13_v34 = vld [vmem:[%s2685_s0 + $0x8] sm:$0xff]  ;;  %v1652_v35 = vcombine.low %v12_v32, %v20_v33  ;;  %v1653_v36 = vcombine.high %v12_v32, %v20_v33 }
   0xc   :  { %1836 = vmatpush3.bf16.msra.mxu0 %v2065_v10  ;;  %v2082_v27 = vld [vmem:[%s2684_s1 + $0xb0] sm:$0xff]   ;;  %v2086_v31 = vld [vmem:[%s2684_s1 + $0xb8] sm:$0xff]   ;;  %v21_v37 = vld [vmem:[%s2685_s0 + $0x48] sm:$0xff] }
   0xd   :  { %1864 = vmatpush3.bf16.msra.mxu1 %v2066_v11  ;;  %1837 = vmatprep.subr.bf16.mxu0 %v2067_v12  ;;  %v1654_v38 = vcombine.low %v13_v34, %v21_v37  ;;  %v1655_v39 = vcombine.high %v13_v34, %v21_v37  ;;  %v2087_v40 = vld [vmem:[%s2684_s1 + $0x140] sm:$0xff]   ;;  %v2091_v44 = vld [vmem:[%s2684_s1 + $0x148] sm:$0xff]   ;;  %v2095_v48 = vld [vmem:[%s2684_s1 + $0x150] sm:$0xff]  }
   0xe   :  { %1865 = vmatprep.subr.bf16.mxu1 %v2068_v13  ;;  %1260 = vmatprep.mubr.bf16.mxu0 %v1653_v36  ;;  %v2088_v41 = vld [vmem:[%s2684_s1 + $0x1c0] sm:$0xff]   ;;  %v2092_v45 = vld [vmem:[%s2684_s1 + $0x1c8] sm:$0xff]   ;;  %v2096_v49 = vld [vmem:[%s2684_s1 + $0x1d0] sm:$0xff]  }
   0xf   :  { %1309 = vmatprep.mubr.bf16.mxu1 %v1655_v39  ;;  %v2089_v42 = vld [vmem:[%s2684_s1 + $0x100] sm:$0xff]   ;;  %v2093_v46 = vld [vmem:[%s2684_s1 + $0x108] sm:$0xff]   ;;  %v2097_v50 = vld [vmem:[%s2684_s1 + $0x110] sm:$0xff]  }
  0x10   :  { %1838 = vmatpush3.bf16.msra.mxu0 %v2069_v14  ;;  %v2090_v43 = vld [vmem:[%s2684_s1 + $0x180] sm:$0xff]   ;;  %v2094_v47 = vld [vmem:[%s2684_s1 + $0x188] sm:$0xff]   ;;  %v2098_v51 = vld [vmem:[%s2684_s1 + $0x190] sm:$0xff]  }
  0x11   :  { %1866 = vmatpush3.bf16.msra.mxu1 %v2070_v15  ;;  %1839 = vmatprep.subr.bf16.mxu0 %v2071_v16  ;;  %v2099_v52 = vld [vmem:[%s2684_s1 + $0x158] sm:$0xff]   ;;  %v2103_v56 = vld [vmem:[%s2684_s1 + $0x160] sm:$0xff]   ;;  %v2107_v60 = vld [vmem:[%s2684_s1 + $0x168] sm:$0xff]  }
  0x12   :  { %1867 = vmatprep.subr.bf16.mxu1 %v2072_v17  ;;  %v2100_v53 = vld [vmem:[%s2684_s1 + $0x1d8] sm:$0xff]   ;;  %v2104_v57 = vld [vmem:[%s2684_s1 + $0x1e0] sm:$0xff]   ;;  %v2108_v61 = vld [vmem:[%s2684_s1 + $0x1e8] sm:$0xff]  }
  0x13   :  { %v2101_v54 = vld [vmem:[%s2684_s1 + $0x118] sm:$0xff]   ;;  %v2105_v58 = vld [vmem:[%s2684_s1 + $0x120] sm:$0xff]   ;;  %v29_v1 = vld [vmem:[%s2685_s0 + $0x88] sm:$0xff] }
  0x14   :  { %1840 = vmatpush3.bf16.msra.mxu0 %v2073_v18  ;;  %v2102_v55 = vld [vmem:[%s2684_s1 + $0x198] sm:$0xff]   ;;  %v2106_v59 = vld [vmem:[%s2684_s1 + $0x1a0] sm:$0xff]   ;;  %v37_v2 = vld [vmem:[%s2685_s0 + $0xc8] sm:$0xff] }
  0x15   :  { %1868 = vmatpush3.bf16.msra.mxu1 %v2074_v19  ;;  %1841 = vmatprep.subr.bf16.mxu0 %v2075_v20  ;;  %v28_v62 = vld [vmem:[%s2685_s0 + $0x80] sm:$0xff]  ;;  %v1671_v4 = vcombine.high %v29_v1, %v37_v2  ;;  %v2109_v5 = vld [vmem:[%s2684_s1 + $0x128] sm:$0xff]   ;;  %v1670_v6 = vcombine.low %v29_v1, %v37_v2  ;;  %v2111_v8 = vld [vmem:[%s2684_s1 + $0x170] sm:$0xff]  }
  0x16   :  { %1869 = vmatprep.subr.bf16.mxu1 %v2076_v21  ;;  %v36_v63 = vld [vmem:[%s2685_s0 + $0xc0] sm:$0xff]  ;;  %v2110_v7 = vld [vmem:[%s2684_s1 + $0x1a8] sm:$0xff]   ;;  %v2112_v9 = vld [vmem:[%s2684_s1 + $0x1f0] sm:$0xff]  }
  0x17   :  { %v1669_v0 = vcombine.high %v28_v62, %v36_v63  ;;  %v1668_v3 = vcombine.low %v28_v62, %v36_v63  ;;  %v2113_v10 = vld [vmem:[%s2684_s1 + $0x130] sm:$0xff]   ;;  %v2115_v12 = vld [vmem:[%s2684_s1 + $0x178] sm:$0xff]   ;;  %v24_v1 = vld [vmem:[%s2685_s0 + $0x60] sm:$0xff] }
  0x18   :  { %1842 = vmatpush3.bf16.msra.mxu0 %v2077_v22  ;;  %v2114_v11 = vld [vmem:[%s2684_s1 + $0x1b0] sm:$0xff]   ;;  %v2116_v13 = vld [vmem:[%s2684_s1 + $0x1f8] sm:$0xff]  }
  0x19   :  { %1870 = vmatpush3.bf16.msra.mxu1 %v2078_v23  ;;  %1843 = vmatprep.subr.bf16.mxu0 %v2079_v24  ;;  %v2117_v14 = vld [vmem:[%s2684_s1 + $0x138] sm:$0xff]   ;;  %v14_v16 = vld [vmem:[%s2685_s0 + $0x10] sm:$0xff]  ;;  %v2119_v24 = vld [vmem:[%s2684_s1 + $0x240] sm:$0xff]  }
  0x1a   :  { %1871 = vmatprep.subr.bf16.mxu1 %v2080_v25  ;;  %v2118_v15 = vld [vmem:[%s2684_s1 + $0x1b8] sm:$0xff]   ;;  %v22_v17 = vld [vmem:[%s2685_s0 + $0x50] sm:$0xff]  ;;  %v2120_v25 = vld [vmem:[%s2684_s1 + $0x2c0] sm:$0xff]  }
  0x1b   :  { %v15_v18 = vld [vmem:[%s2685_s0 + $0x18] sm:$0xff]  ;;  %v1656_v20 = vcombine.low %v14_v16, %v22_v17  ;;  %v1657_v21 = vcombine.high %v14_v16, %v22_v17  ;;  %v30_v32 = vld [vmem:[%s2685_s0 + $0x90] sm:$0xff]  ;;  %v32_v16 = vld [vmem:[%s2685_s0 + $0xa0] sm:$0xff] }
  0x1c   :  { %1844 = vmatpush3.bf16.msra.mxu0 %v2081_v26  ;;  %v23_v19 = vld [vmem:[%s2685_s0 + $0x58] sm:$0xff]  ;;  %v2121_v26 = vld [vmem:[%s2684_s1 + $0x200] sm:$0xff]   ;;  %v38_v33 = vld [vmem:[%s2685_s0 + $0xd0] sm:$0xff] }
  0x1d   :  { %1872 = vmatpush3.bf16.msra.mxu1 %v2082_v27  ;;  %1845 = vmatprep.subr.bf16.mxu0 %v2083_v28  ;;  %v1658_v22 = vcombine.low %v15_v18, %v23_v19  ;;  %v1659_v23 = vcombine.high %v15_v18, %v23_v19  ;;  %v2122_v27 = vld [vmem:[%s2684_s1 + $0x280] sm:$0xff]   ;;  %v2123_v28 = vld [vmem:[%s2684_s1 + $0x248] sm:$0xff]   ;;  %v1673_v34 = vcombine.high %v30_v32, %v38_v33  ;;  %v2127_v36 = vld [vmem:[%s2684_s1 + $0x250] sm:$0xff]  }
  0x1e   :  { %1873 = vmatprep.subr.bf16.mxu1 %v2084_v29  ;;  %v2124_v29 = vld [vmem:[%s2684_s1 + $0x2c8] sm:$0xff]   ;;  %v2128_v37 = vld [vmem:[%s2684_s1 + $0x2d0] sm:$0xff]   ;;  %v39_v39 = vld [vmem:[%s2685_s0 + $0xd8] sm:$0xff] }
  0x1f   :  { %v2149_v62 = vld [vmem:[%s2684_s1 + $0x238] sm:$0xff]   ;;  %v40_v17 = vld [vmem:[%s2685_s0 + $0xe0] sm:$0xff] }
  0x20   :  { %1846 = vmatpush3.bf16.msra.mxu0 %v2085_v30  ;;  %v2125_v30 = vld [vmem:[%s2684_s1 + $0x208] sm:$0xff]   ;;  %v2150_v63 = vld [vmem:[%s2684_s1 + $0x2b8] sm:$0xff]   ;;  %v1677_v18 = vcombine.high %v32_v16, %v40_v17  ;;  %v1676_v19 = vcombine.low %v32_v16, %v40_v17 }
  0x21   :  { %1874 = vmatpush3.bf16.msra.mxu1 %v2086_v31  ;;  %1887 = vmatprep.subr.bf16.mxu0 %v2087_v40  ;;  %v2126_v31 = vld [vmem:[%s2684_s1 + $0x288] sm:$0xff]  }
  0x22   :  { %1915 = vmatprep.subr.bf16.mxu1 %v2088_v41  ;;  %v2129_v41 = vld [vmem:[%s2684_s1 + $0x210] sm:$0xff]  }
  0x23   :  { %1261 = vmatmul.mubr.bf16.vlgmr.msra.gmra.mrb[0].mxu0 %v1652_v35  ;;  %v1672_v35 = vcombine.low %v30_v32, %v38_v33  ;;  %v2167_v32 = vld [vmem:[%s2684_s1 + $0x360] sm:$0xff]  }
  0x24   :  { %1310 = vmatmul.mubr.bf16.vlgmr.msra.gmra.mrb[0].mxu1 %v1654_v38  ;;  %1888 = vmatpush3.bf16.msra.mxu0 %v2089_v42  ;;  %v31_v38 = vld [vmem:[%s2685_s0 + $0x98] sm:$0xff]  ;;  %v2168_v33 = vld [vmem:[%s2684_s1 + $0x3e0] sm:$0xff]  }
  0x25   :  { %1916 = vmatpush3.bf16.msra.mxu1 %v2090_v43  ;;  %1889 = vmatprep.subr.bf16.mxu0 %v2091_v44  ;;  %v1675_v40 = vcombine.high %v31_v38, %v39_v39  ;;  %v1674_v42 = vcombine.low %v31_v38, %v39_v39  ;;  %v2130_v43 = vld [vmem:[%s2684_s1 + $0x290] sm:$0xff]   ;;  %v2131_v44 = vld [vmem:[%s2684_s1 + $0x258] sm:$0xff]   ;;  %v2173_v38 = vld [vmem:[%s2684_s1 + $0x328] sm:$0xff]  }
  0x26   :  { %1917 = vmatprep.subr.bf16.mxu1 %v2092_v45  ;;  %1268 = vmatprep.mubr.bf16.mxu0 %v1669_v0  ;;  %v2132_v45 = vld [vmem:[%s2684_s1 + $0x2d8] sm:$0xff]   ;;  %v16_v0 = vld [vmem:[%s2685_s0 + $0x20] sm:$0xff]  ;;  %v2174_v39 = vld [vmem:[%s2684_s1 + $0x3a8] sm:$0xff]  }
  0x27   :  { %1317 = vmatprep.mubr.bf16.mxu1 %v1671_v4  ;;  %v1660_v2 = vcombine.low %v16_v0, %v24_v1  ;;  %v17_v4 = vld [vmem:[%s2685_s0 + $0x28] sm:$0xff] }
  0x28   :  { %1890 = vmatpush3.bf16.msra.mxu0 %v2093_v46  ;;  %v2133_v46 = vld [vmem:[%s2684_s1 + $0x218] sm:$0xff]  }
  0x29   :  { %1918 = vmatpush3.bf16.msra.mxu1 %v2094_v47  ;;  %1891 = vmatprep.subr.bf16.mxu0 %v2095_v48  ;;  %v2134_v47 = vld [vmem:[%s2684_s1 + $0x298] sm:$0xff]   ;;  %v2135_v48 = vld [vmem:[%s2684_s1 + $0x260] sm:$0xff]  }
  0x2a   :  { %1919 = vmatprep.subr.bf16.mxu1 %v2096_v49  ;;  %v2136_v49 = vld [vmem:[%s2684_s1 + $0x2e0] sm:$0xff]  }
  0x2b   :  { %1269 = vmatmul.mubr.bf16.gmra.mrb[4].mxu0 %v1668_v3  ;;  %v1661_v3 = vcombine.high %v16_v0, %v24_v1 }
  0x2c   :  { %1892 = vmatpush3.bf16.msra.mxu0 %v2097_v50  ;;  %1318 = vmatmul.mubr.bf16.gmra.mrb[4].mxu1 %v1670_v6  ;;  %v2137_v50 = vld [vmem:[%s2684_s1 + $0x220] sm:$0xff]  }
  0x2d   :  { %1920 = vmatpush3.bf16.msra.mxu1 %v2098_v51  ;;  %1893 = vmatprep.subr.bf16.mxu0 %v2099_v52  ;;  %v2138_v51 = vld [vmem:[%s2684_s1 + $0x2a0] sm:$0xff]   ;;  %v2139_v52 = vld [vmem:[%s2684_s1 + $0x268] sm:$0xff]  }
  0x2e   :  { %1921 = vmatprep.subr.bf16.mxu1 %v2100_v53  ;;  %1358 = vmatprep.mubr.bf16.mxu0 %v1657_v21  ;;  %v2140_v53 = vld [vmem:[%s2684_s1 + $0x2e8] sm:$0xff]   ;;  %v2160_v21 = vld [vmem:[%s2684_s1 + $0x3d0] sm:$0xff]  }
  0x2f   :  { %1407 = vmatprep.mubr.bf16.mxu1 %v1659_v23  ;;  %v41_v23 = vld [vmem:[%s2685_s0 + $0xe8] sm:$0xff] }
  0x30   :  { %1894 = vmatpush3.bf16.msra.mxu0 %v2101_v54  ;;  %v2141_v54 = vld [vmem:[%s2684_s1 + $0x228] sm:$0xff]  }
  0x31   :  { %1922 = vmatpush3.bf16.msra.mxu1 %v2102_v55  ;;  %1895 = vmatprep.subr.bf16.mxu0 %v2103_v56  ;;  %v2142_v55 = vld [vmem:[%s2684_s1 + $0x2a8] sm:$0xff]   ;;  %v2143_v56 = vld [vmem:[%s2684_s1 + $0x270] sm:$0xff]  }
  0x32   :  { %1923 = vmatprep.subr.bf16.mxu1 %v2104_v57  ;;  %v2144_v57 = vld [vmem:[%s2684_s1 + $0x2f0] sm:$0xff]  }
  0x34   :  { %1896 = vmatpush3.bf16.msra.mxu0 %v2105_v58  ;;  %v2145_v58 = vld [vmem:[%s2684_s1 + $0x230] sm:$0xff]  }
  0x35   :  { %1924 = vmatpush3.bf16.msra.mxu1 %v2106_v59  ;;  %1897 = vmatprep.subr.bf16.mxu0 %v2107_v60  ;;  %v2146_v59 = vld [vmem:[%s2684_s1 + $0x2b0] sm:$0xff]   ;;  %v2147_v60 = vld [vmem:[%s2684_s1 + $0x278] sm:$0xff]  }
  0x36   :  { %1925 = vmatprep.subr.bf16.mxu1 %v2108_v61  ;;  %v2148_v61 = vld [vmem:[%s2684_s1 + $0x2f8] sm:$0xff]  }
  0x38   :  { %1898 = vmatpush3.bf16.msra.mxu0 %v2109_v5  ;;  %v25_v5 = vld [vmem:[%s2685_s0 + $0x68] sm:$0xff] }
  0x39   :  { %1926 = vmatpush3.bf16.msra.mxu1 %v2110_v7  ;;  %1899 = vmatprep.subr.bf16.mxu0 %v2111_v8  ;;  %v1662_v6 = vcombine.low %v17_v4, %v25_v5  ;;  %v1663_v7 = vcombine.high %v17_v4, %v25_v5  ;;  %v2151_v8 = vld [vmem:[%s2684_s1 + $0x340] sm:$0xff]  }
  0x3a   :  { %1927 = vmatprep.subr.bf16.mxu1 %v2112_v9  ;;  %v2152_v9 = vld [vmem:[%s2684_s1 + $0x3c0] sm:$0xff]  }
  0x3c   :  { %1900 = vmatpush3.bf16.msra.mxu0 %v2113_v10  ;;  %v2153_v10 = vld [vmem:[%s2684_s1 + $0x300] sm:$0xff]  }
  0x3d   :  { %1928 = vmatpush3.bf16.msra.mxu1 %v2114_v11  ;;  %1901 = vmatprep.subr.bf16.mxu0 %v2115_v12  ;;  %v2154_v11 = vld [vmem:[%s2684_s1 + $0x380] sm:$0xff]   ;;  %v2155_v12 = vld [vmem:[%s2684_s1 + $0x348] sm:$0xff]  }
  0x3e   :  { %1929 = vmatprep.subr.bf16.mxu1 %v2116_v13  ;;  %v2156_v13 = vld [vmem:[%s2684_s1 + $0x3c8] sm:$0xff]  }
  0x40   :  { %1902 = vmatpush3.bf16.msra.mxu0 %v2117_v14  ;;  %v2157_v14 = vld [vmem:[%s2684_s1 + $0x308] sm:$0xff]  }
  0x41   :  { %1930 = vmatpush3.bf16.msra.mxu1 %v2118_v15  ;;  %1943 = vmatprep.subr.bf16.mxu0 %v2119_v24  ;;  %v2158_v15 = vld [vmem:[%s2684_s1 + $0x388] sm:$0xff]  }
  0x42   :  { %1971 = vmatprep.subr.bf16.mxu1 %v2120_v25  ;;  %v2161_v25 = vld [vmem:[%s2684_s1 + $0x310] sm:$0xff]  }
  0x43   :  { %1359 = vmatmul.mubr.bf16.vlgmr.msra.gmra.mrb[8].mxu0 %v1656_v20  ;;  %v2159_v20 = vld [vmem:[%s2684_s1 + $0x350] sm:$0xff]  }
  0x44   :  { %1408 = vmatmul.mubr.bf16.vlgmr.msra.gmra.mrb[8].mxu1 %v1658_v22  ;;  %1944 = vmatpush3.bf16.msra.mxu0 %v2121_v26  ;;  %v33_v22 = vld [vmem:[%s2685_s0 + $0xa8] sm:$0xff] }
  0x45   :  { %1972 = vmatpush3.bf16.msra.mxu1 %v2122_v27  ;;  %1945 = vmatprep.subr.bf16.mxu0 %v2123_v28  ;;  %v1679_v24 = vcombine.high %v33_v22, %v41_v23  ;;  %v1678_v26 = vcombine.low %v33_v22, %v41_v23  ;;  %v2162_v27 = vld [vmem:[%s2684_s1 + $0x390] sm:$0xff]   ;;  %v2163_v28 = vld [vmem:[%s2684_s1 + $0x358] sm:$0xff]  }
  0x46   :  { %1973 = vmatprep.subr.bf16.mxu1 %v2124_v29  ;;  %1366 = vmatprep.mubr.bf16.mxu0 %v1673_v34  ;;  %v2164_v29 = vld [vmem:[%s2684_s1 + $0x3d8] sm:$0xff]   ;;  %v2169_v34 = vld [vmem:[%s2684_s1 + $0x320] sm:$0xff]  }
  0x47   :  { %1415 = vmatprep.mubr.bf16.mxu1 %v1675_v40  ;;  %v2175_v40 = vld [vmem:[%s2684_s1 + $0x370] sm:$0xff]  }
  0x48   :  { %1946 = vmatpush3.bf16.msra.mxu0 %v2125_v30  ;;  %v2165_v30 = vld [vmem:[%s2684_s1 + $0x318] sm:$0xff]  }
  0x49   :  { %1974 = vmatpush3.bf16.msra.mxu1 %v2126_v31  ;;  %1947 = vmatprep.subr.bf16.mxu0 %v2127_v36  ;;  %v2166_v31 = vld [vmem:[%s2684_s1 + $0x398] sm:$0xff]   ;;  %v2171_v36 = vld [vmem:[%s2684_s1 + $0x368] sm:$0xff]  }
  0x4a   :  { %1975 = vmatprep.subr.bf16.mxu1 %v2128_v37  ;;  %v2172_v37 = vld [vmem:[%s2684_s1 + $0x3e8] sm:$0xff]  }
  0x4b   :  { %1367 = vmatmul.mubr.bf16.gmra.mrb[12].mxu0 %v1672_v35  ;;  %v2170_v35 = vld [vmem:[%s2684_s1 + $0x3a0] sm:$0xff]  }
  0x4c   :  { %1948 = vmatpush3.bf16.msra.mxu0 %v2129_v41  ;;  %1416 = vmatmul.mubr.bf16.gmra.mrb[12].mxu1 %v1674_v42  ;;  %v2176_v41 = vld [vmem:[%s2684_s1 + $0x3f0] sm:$0xff]  }
  0x4d   :  { %1976 = vmatpush3.bf16.msra.mxu1 %v2130_v43  ;;  %1949 = vmatprep.subr.bf16.mxu0 %v2131_v44  ;;  %v2177_v42 = vld [vmem:[%s2684_s1 + $0x330] sm:$0xff]   ;;  %v2179_v44 = vld [vmem:[%s2684_s1 + $0x378] sm:$0xff]  }
  0x4e   :  { %1977 = vmatprep.subr.bf16.mxu1 %v2132_v45  ;;  %1456 = vmatprep.mubr.bf16.mxu0 %v1661_v3  ;;  %v2178_v43 = vld [vmem:[%s2684_s1 + $0x3b0] sm:$0xff]   ;;  %v2180_v45 = vld [vmem:[%s2684_s1 + $0x3f8] sm:$0xff]  }
  0x4f   :  { %1505 = vmatprep.mubr.bf16.mxu1 %v1663_v7 }
  0x50   :  { %1950 = vmatpush3.bf16.msra.mxu0 %v2133_v46  ;;  %v2181_v46 = vld [vmem:[%s2684_s1 + $0x338] sm:$0xff]  }
  0x51   :  { %1978 = vmatpush3.bf16.msra.mxu1 %v2134_v47  ;;  %1951 = vmatprep.subr.bf16.mxu0 %v2135_v48  ;;  %v2182_v47 = vld [vmem:[%s2684_s1 + $0x3b8] sm:$0xff]   ;;  %v18_v48 = vld [vmem:[%s2685_s0 + $0x30] sm:$0xff] }
  0x52   :  { %1979 = vmatprep.subr.bf16.mxu1 %v2136_v49  ;;  %v26_v49 = vld [vmem:[%s2685_s0 + $0x70] sm:$0xff] }
  0x54   :  { %1952 = vmatpush3.bf16.msra.mxu0 %v2137_v50  ;;  %v19_v50 = vld [vmem:[%s2685_s0 + $0x38] sm:$0xff] }
  0x55   :  { %1980 = vmatpush3.bf16.msra.mxu1 %v2138_v51  ;;  %1953 = vmatprep.subr.bf16.mxu0 %v2139_v52  ;;  %v1664_v51 = vcombine.low %v18_v48, %v26_v49  ;;  %v1665_v52 = vcombine.high %v18_v48, %v26_v49 }
  0x56   :  { %1981 = vmatprep.subr.bf16.mxu1 %v2140_v53  ;;  %v27_v53 = vld [vmem:[%s2685_s0 + $0x78] sm:$0xff] }
  0x58   :  { %1954 = vmatpush3.bf16.msra.mxu0 %v2141_v54  ;;  %v34_v54 = vld [vmem:[%s2685_s0 + $0xb0] sm:$0xff] }
  0x59   :  { %1982 = vmatpush3.bf16.msra.mxu1 %v2142_v55  ;;  %1955 = vmatprep.subr.bf16.mxu0 %v2143_v56  ;;  %v42_v55 = vld [vmem:[%s2685_s0 + $0xf0] sm:$0xff]  ;;  %v1666_v56 = vcombine.low %v19_v50, %v27_v53 }
  0x5a   :  { %1983 = vmatprep.subr.bf16.mxu1 %v2144_v57  ;;  %v1667_v57 = vcombine.high %v19_v50, %v27_v53 }
  0x5c   :  { %1956 = vmatpush3.bf16.msra.mxu0 %v2145_v58  ;;  %v1681_v58 = vcombine.high %v34_v54, %v42_v55 }
  0x5d   :  { %1984 = vmatpush3.bf16.msra.mxu1 %v2146_v59  ;;  %1957 = vmatprep.subr.bf16.mxu0 %v2147_v60  ;;  %v35_v59 = vld [vmem:[%s2685_s0 + $0xb8] sm:$0xff] }
  0x5e   :  { %1985 = vmatprep.subr.bf16.mxu1 %v2148_v61  ;;  %v43_v60 = vld [vmem:[%s2685_s0 + $0xf8] sm:$0xff] }
  0x5f   :  { %v1683_v61 = vcombine.high %v35_v59, %v43_v60 }
  0x60   :  { %1958 = vmatpush3.bf16.msra.mxu0 %v2149_v62  ;;  %v1680_v62 = vcombine.low %v34_v54, %v42_v55 }
  0x61   :  { %1986 = vmatpush3.bf16.msra.mxu1 %v2150_v63  ;;  %1999 = vmatprep.subr.bf16.mxu0 %v2151_v8  ;;  %v1682_v63 = vcombine.low %v35_v59, %v43_v60 }
  0x62   :  { %2027 = vmatprep.subr.bf16.mxu1 %v2152_v9 }
  0x63   :  { %1457 = vmatmul.mubr.bf16.vlgmr.msra.gmra.mrb[16].mxu0 %v1660_v2 }
  0x64   :  { %1506 = vmatmul.mubr.bf16.vlgmr.msra.gmra.mrb[16].mxu1 %v1662_v6  ;;  %2000 = vmatpush3.bf16.msra.mxu0 %v2153_v10 }
  0x65   :  { %2028 = vmatpush3.bf16.msra.mxu1 %v2154_v11  ;;  %2001 = vmatprep.subr.bf16.mxu0 %v2155_v12 }
  0x66   :  { %2029 = vmatprep.subr.bf16.mxu1 %v2156_v13  ;;  %1464 = vmatprep.mubr.bf16.mxu0 %v1677_v18 }
  0x67   :  { %1513 = vmatprep.mubr.bf16.mxu1 %v1679_v24 }
  0x68   :  { %2002 = vmatpush3.bf16.msra.mxu0 %v2157_v14 }
  0x69   :  { %2030 = vmatpush3.bf16.msra.mxu1 %v2158_v15  ;;  %2003 = vmatprep.subr.bf16.mxu0 %v2159_v20 }
  0x6a   :  { %2031 = vmatprep.subr.bf16.mxu1 %v2160_v21 }
  0x6b   :  { %1465 = vmatmul.mubr.bf16.gmra.mrb[20].mxu0 %v1676_v19 }
  0x6c   :  { %2004 = vmatpush3.bf16.msra.mxu0 %v2161_v25  ;;  %1514 = vmatmul.mubr.bf16.gmra.mrb[20].mxu1 %v1678_v26 }
  0x6d   :  { %2032 = vmatpush3.bf16.msra.mxu1 %v2162_v27  ;;  %2005 = vmatprep.subr.bf16.mxu0 %v2163_v28 }
  0x6e   :  { %2033 = vmatprep.subr.bf16.mxu1 %v2164_v29  ;;  %1554 = vmatprep.mubr.bf16.mxu0 %v1665_v52 }
  0x6f   :  { %1603 = vmatprep.mubr.bf16.mxu1 %v1667_v57 }
  0x70   :  { %2006 = vmatpush3.bf16.msra.mxu0 %v2165_v30 }
  0x71   :  { %2034 = vmatpush3.bf16.msra.mxu1 %v2166_v31  ;;  %2007 = vmatprep.subr.bf16.mxu0 %v2167_v32 }
  0x72   :  { %2035 = vmatprep.subr.bf16.mxu1 %v2168_v33 }
  0x74   :  { %2008 = vmatpush3.bf16.msra.mxu0 %v2169_v34 }
  0x75   :  { %2036 = vmatpush3.bf16.msra.mxu1 %v2170_v35  ;;  %2009 = vmatprep.subr.bf16.mxu0 %v2171_v36 }
  0x76   :  { %2037 = vmatprep.subr.bf16.mxu1 %v2172_v37 }
  0x78   :  { %2010 = vmatpush3.bf16.msra.mxu0 %v2173_v38 }
  0x79   :  { %2038 = vmatpush3.bf16.msra.mxu1 %v2174_v39  ;;  %2011 = vmatprep.subr.bf16.mxu0 %v2175_v40 }
  0x7a   :  { %2039 = vmatprep.subr.bf16.mxu1 %v2176_v41 }
  0x7c   :  { %2012 = vmatpush3.bf16.msra.mxu0 %v2177_v42 }
  0x7d   :  { %2040 = vmatpush3.bf16.msra.mxu1 %v2178_v43  ;;  %2013 = vmatprep.subr.bf16.mxu0 %v2179_v44 }
  0x7e   :  { %2041 = vmatprep.subr.bf16.mxu1 %v2180_v45 }
  0x80   :  { %2014 = vmatpush3.bf16.msra.mxu0 %v2181_v46 }
  0x81   :  { %2042 = vmatpush3.bf16.msra.mxu1 %v2182_v47 }
  0x83   :  { %1555 = vmatmul.mubr.bf16.vlgmr.msra.gmra.mrb[24].mxu0 %v1664_v51 }
  0x84   :  { %1604 = vmatmul.mubr.bf16.vlgmr.msra.gmra.mrb[24].mxu1 %v1666_v56  ;;  %1562 = vmatprep.mubr.bf16.mxu0 %v1681_v58 }
  0x85   :  { %1611 = vmatprep.mubr.bf16.mxu1 %v1683_v61 }
  0x8b   :  { %1563 = vmatmul.mubr.bf16.gmra.mrb[28].mxu0 %v1680_v62 }
  0x8c   :  { %1612 = vmatmul.mubr.bf16.gmra.mrb[28].mxu1 %v1682_v63 }
  0xf6   :  { %v1847_v0 = vpop.f32.mrb[0].mxu0 }
  0xf7   :  { %v1875_v1 = vpop.f32.mrb[0].mxu1  ;;  %v1848_v2 = vpop.f32.mrb[1].mxu0 }
  0xf8   :  { %v1849_v3 = vadd.f32 %v1848_v2, %v1847_v0  ;;  %v1876_v4 = vpop.f32.mrb[1].mxu1  ;;  %v1850_v5 = vpop.f32.mrb[2].mxu0 }
  0xf9   :  { %v1877_v6 = vadd.f32 %v1876_v4, %v1875_v1  ;;  %v1878_v7 = vpop.f32.mrb[2].mxu1  ;;  %v1851_v8 = vpop.f32.mrb[3].mxu0 }
  0xfa   :  { %v1852_v9 = vadd.f32 %v1851_v8, %v1850_v5  ;;  %v1879_v10 = vpop.f32.mrb[3].mxu1 }
  0xfb   :  { %v1312_v11 = vadd.f32 %v1877_v6, %v1849_v3  ;;  %v1880_v12 = vadd.f32 %v1879_v10, %v1878_v7 }
  0xfd   :  { %v1315_v13 = vadd.f32 %v1880_v12, %v1852_v9 }
  0xfe   :  { %v1853_v14 = vpop.f32.mrb[4].mxu0 }
  0xff   :  { %v1881_v15 = vpop.f32.mrb[4].mxu1  ;;  %v1854_v16 = vpop.f32.mrb[5].mxu0 }
 0x100   :  { %v1855_v17 = vadd.f32 %v1854_v16, %v1853_v14  ;;  %v1882_v18 = vpop.f32.mrb[5].mxu1  ;;  %v1856_v19 = vpop.f32.mrb[6].mxu0 }
 0x101   :  { %v1883_v20 = vadd.f32 %v1882_v18, %v1881_v15  ;;  %v1884_v21 = vpop.f32.mrb[6].mxu1  ;;  %v1857_v22 = vpop.f32.mrb[7].mxu0 }
 0x102   :  { %v1858_v23 = vadd.f32 %v1857_v22, %v1856_v19  ;;  %v1885_v24 = vpop.f32.mrb[7].mxu1 }
 0x103   :  { %v1320_v25 = vadd.f32 %v1883_v20, %v1855_v17  ;;  %v1886_v26 = vadd.f32 %v1885_v24, %v1884_v21 }
 0x105   :  { %v1323_v27 = vadd.f32 %v1886_v26, %v1858_v23 }
 0x116   :  { %v1903_v28 = vpop.f32.mrb[8].mxu0 }
 0x117   :  { %v1931_v29 = vpop.f32.mrb[8].mxu1  ;;  %v1904_v30 = vpop.f32.mrb[9].mxu0 }
 0x118   :  { %v1932_v31 = vpop.f32.mrb[9].mxu1  ;;  %v1905_v32 = vadd.f32 %v1904_v30, %v1903_v28  ;;  %v1906_v34 = vpop.f32.mrb[10].mxu0 }
 0x119   :  { %v1933_v33 = vadd.f32 %v1932_v31, %v1931_v29  ;;  %v1934_v35 = vpop.f32.mrb[10].mxu1  ;;  %v1907_v36 = vpop.f32.mrb[11].mxu0 }
 0x11a   :  { %v1935_v37 = vpop.f32.mrb[11].mxu1  ;;  %v1361_v38 = vadd.f32 %v1905_v32, %v1312_v11  ;;  %v1908_v39 = vadd.f32 %v1907_v36, %v1906_v34 }
 0x11b   :  { %v1936_v40 = vadd.f32 %v1935_v37, %v1934_v35 }
 0x11c   :  { %v1410_v41 = vadd.f32 %v1933_v33, %v1361_v38  ;;  %v1364_v42 = vadd.f32 %v1908_v39, %v1315_v13 }
 0x11e   :  { %v1413_v43 = vadd.f32 %v1936_v40, %v1364_v42  ;;  %v1909_v44 = vpop.f32.mrb[12].mxu0 }
 0x11f   :  { %v1910_v45 = vpop.f32.mrb[13].mxu0  ;;  %v1937_v50 = vpop.f32.mrb[12].mxu1 }
 0x120   :  { %v1911_v46 = vadd.f32 %v1910_v45, %v1909_v44  ;;  %v1912_v47 = vpop.f32.mrb[14].mxu0  ;;  %v1938_v52 = vpop.f32.mrb[13].mxu1 }
 0x121   :  { %v1913_v48 = vpop.f32.mrb[15].mxu0  ;;  %v1939_v54 = vadd.f32 %v1938_v52, %v1937_v50  ;;  %v1940_v55 = vpop.f32.mrb[14].mxu1 }
 0x122   :  { %v1369_v49 = vadd.f32 %v1911_v46, %v1320_v25  ;;  %v1914_v51 = vadd.f32 %v1913_v48, %v1912_v47  ;;  %v1941_v56 = vpop.f32.mrb[15].mxu1 }
 0x123   :  { %v1942_v58 = vadd.f32 %v1941_v56, %v1940_v55 }
 0x124   :  { %v1372_v53 = vadd.f32 %v1914_v51, %v1323_v27  ;;  %v1418_v57 = vadd.f32 %v1939_v54, %v1369_v49 }
 0x126   :  { %v1421_v59 = vadd.f32 %v1942_v58, %v1372_v53 }
 0x136   :  { %v1959_v60 = vpop.f32.mrb[16].mxu0 }
 0x137   :  { %v1987_v61 = vpop.f32.mrb[16].mxu1  ;;  %v1960_v62 = vpop.f32.mrb[17].mxu0 }
 0x138   :  { %v1961_v63 = vadd.f32 %v1960_v62, %v1959_v60  ;;  %v1988_v0 = vpop.f32.mrb[17].mxu1  ;;  %v1962_v1 = vpop.f32.mrb[18].mxu0 }
 0x139   :  { %v1989_v2 = vadd.f32 %v1988_v0, %v1987_v61  ;;  %v1990_v3 = vpop.f32.mrb[18].mxu1  ;;  %v1963_v4 = vpop.f32.mrb[19].mxu0 }
 0x13a   :  { %v1459_v5 = vadd.f32 %v1961_v63, %v1410_v41  ;;  %v1964_v6 = vadd.f32 %v1963_v4, %v1962_v1  ;;  %v1991_v7 = vpop.f32.mrb[19].mxu1 }
 0x13b   :  { %v1992_v8 = vadd.f32 %v1991_v7, %v1990_v3 }
 0x13c   :  { %v1508_v9 = vadd.f32 %v1989_v2, %v1459_v5  ;;  %v1462_v10 = vadd.f32 %v1964_v6, %v1413_v43 }
 0x13e   :  { %v1511_v11 = vadd.f32 %v1992_v8, %v1462_v10  ;;  %v1965_v12 = vpop.f32.mrb[20].mxu0 }
 0x13f   :  { %v1966_v13 = vpop.f32.mrb[21].mxu0  ;;  %v1993_v16 = vpop.f32.mrb[20].mxu1 }
 0x140   :  { %v1967_v14 = vadd.f32 %v1966_v13, %v1965_v12  ;;  %v1968_v15 = vpop.f32.mrb[22].mxu0  ;;  %v1994_v20 = vpop.f32.mrb[21].mxu1 }
 0x141   :  { %v1969_v17 = vpop.f32.mrb[23].mxu0  ;;  %v1995_v21 = vadd.f32 %v1994_v20, %v1993_v16  ;;  %v1996_v22 = vpop.f32.mrb[22].mxu1 }
 0x142   :  { %v1467_v18 = vadd.f32 %v1967_v14, %v1418_v57  ;;  %v1970_v19 = vadd.f32 %v1969_v17, %v1968_v15  ;;  %v1997_v24 = vpop.f32.mrb[23].mxu1 }
 0x143   :  { %v1998_v26 = vadd.f32 %v1997_v24, %v1996_v22 }
 0x144   :  { %v1470_v23 = vadd.f32 %v1970_v19, %v1421_v59  ;;  %v1516_v25 = vadd.f32 %v1995_v21, %v1467_v18 }
 0x146   :  { %v1519_v27 = vadd.f32 %v1998_v26, %v1470_v23 }
 0x156   :  { %v2015_v28 = vpop.f32.mrb[24].mxu0 }
 0x157   :  { %v2043_v29 = vpop.f32.mrb[24].mxu1  ;;  %v2016_v30 = vpop.f32.mrb[25].mxu0 }
 0x158   :  { %v2017_v31 = vadd.f32 %v2016_v30, %v2015_v28  ;;  %v2044_v32 = vpop.f32.mrb[25].mxu1  ;;  %v2018_v33 = vpop.f32.mrb[26].mxu0 }
 0x159   :  { %v2045_v34 = vadd.f32 %v2044_v32, %v2043_v29  ;;  %v2046_v35 = vpop.f32.mrb[26].mxu1  ;;  %v2019_v36 = vpop.f32.mrb[27].mxu0 }
 0x15a   :  { %v1557_v37 = vadd.f32 %v2017_v31, %v1508_v9  ;;  %v2020_v38 = vadd.f32 %v2019_v36, %v2018_v33  ;;  %v2047_v39 = vpop.f32.mrb[27].mxu1 }
 0x15b   :  { %v2048_v40 = vadd.f32 %v2047_v39, %v2046_v35 }
 0x15c   :  { %v1606_v41 = vadd.f32 %v2045_v34, %v1557_v37  ;;  %v1560_v42 = vadd.f32 %v2020_v38, %v1511_v11 }
 0x15e   :  { %v1620_v43 = vmul.f32 0.2, %v1606_v41  ;;  %v1609_v44 = vadd.f32 %v2048_v40, %v1560_v42  ;;  %v2021_v45 = vpop.f32.mrb[28].mxu0 }
 0x15f   :  { %v2049_v46 = vpop.f32.mrb[28].mxu1  ;;  %v2022_v47 = vpop.f32.mrb[29].mxu0 }
 0x160   :  { %v1621_v48 = vmul.f32 0.2, %v1609_v44  ;;  %v2023_v49 = vadd.f32 %v2022_v47, %v2021_v45  ;;  %v2050_v50 = vpop.f32.mrb[29].mxu1  ;;  %v2024_v51 = vpop.f32.mrb[30].mxu0  ;;  %v1624_v55 = vmax.f32 %v1606_v41, %v1620_v43 }
 0x161   :  { %v2051_v52 = vadd.f32 %v2050_v50, %v2049_v46  ;;  %v2052_v53 = vpop.f32.mrb[30].mxu1  ;;  %v2025_v54 = vpop.f32.mrb[31].mxu0 }
 0x162   :  { %v1625_v56 = vmax.f32 %v1609_v44, %v1621_v48  ;;  %v1565_v57 = vadd.f32 %v2023_v49, %v1516_v25  ;;  %v2026_v58 = vadd.f32 %v2025_v54, %v2024_v51  ;;  %v2053_v59 = vpop.f32.mrb[31].mxu1 }
 0x163   :  { %v2054_v60 = vadd.f32 %v2053_v59, %v2052_v53 }
 0x164   :  { %v1823_v61 = vpack.c.bf16 %v1625_v56, %v1624_v55  ;;  %v1614_v62 = vadd.f32 %v2051_v52, %v1565_v57  ;;  %v1568_v63 = vadd.f32 %v2026_v58, %v1519_v27 }
 0x166   :  { %1824 = vst [vmem:[%s2686_s2] sm:$0xff] %v1823_v61   ;;  %v1622_v0 = vmul.f32 0.2, %v1614_v62  ;;  %v1617_v1 = vadd.f32 %v2054_v60, %v1568_v63 }
 0x168   :  { %v1623_v2 = vmul.f32 0.2, %v1617_v1  ;;  %v1626_v3 = vmax.f32 %v1614_v62, %v1622_v0 }
 0x16a   :  { %v1627_v4 = vmax.f32 %v1617_v1, %v1623_v2 }
 0x16c   :  { %v1828_v5 = vpack.c.bf16 %v1627_v4, %v1626_v3 }
 0x16e   :  { %1830 = vst [vmem:[%s2686_s2 + $0x8] sm:$0xff] %v1828_v5  }

// kernel: dcgan_d_nobn_forward.5
= control target key start
LH: loop header
LB: loop body
LE: loop exit
PB: predicated region body
PF: predicated region fallthrough
CT: control target
= control target key end

     0   :  { %v2524_v6 = vmov 1983009808   ;;  %v26_v8 = vlaneseq  ;;  %vm106_vm0 = vcmask 1041408   ;;  %s3005_s0 = inlined_call_operand.vmem [shape: bf16[2,2048], index: 0, kind: input, shape index: {}]   ;;  %s3006_s1 = inlined_call_operand.vmem [shape: bf16[2048,128], index: 1, kind: input, shape index: {}]   ;;  %s3007_s2 = inlined_call_operand.hbm [shape: f32[1,128], index: 2, kind: output, shape index: {}]  }
   0x1   :  { %v1842_v0 = vld [vmem:[%s3006_s1 + $0x40] sm:$0xff]   ;;  %v1843_v4 = vld [vmem:[%s3006_s1 + $0x48] sm:$0xff]   ;;  %v24_v7 = vunpack.c.l.s4 %v2524_v6  ;;  %v1844_v11 = vld [vmem:[%s3006_s1 + $0x50] sm:$0xff]  }
   0x2   :  { %v1858_v1 = vld [vmem:[%s3006_s1 + $0xc0] sm:$0xff]   ;;  %2243 = vmatprep.subr.bf16.mxu0 %v1842_v0  ;;  %v1859_v5 = vld [vmem:[%s3006_s1 + $0xc8] sm:$0xff]   ;;  %v1860_v12 = vld [vmem:[%s3006_s1 + $0xd0] sm:$0xff]   ;;  %v27_v14 = vshrl.u32 %v26_v8, 7 }
   0x3   :  { %v1324_v2 = vld [vmem:[%s3006_s1] sm:$0xff]   ;;  %2275 = vmatprep.subr.bf16.mxu1 %v1858_v1  ;;  %v1835_v9 = vld [vmem:[%s3006_s1 + $0x8] sm:$0xff]   ;;  %v25_v13 = vunpack.c.0.s8 %v24_v7  ;;  %v1836_v15 = vld [vmem:[%s3006_s1 + $0x10] sm:$0xff]  }
   0x4   :  { %v1850_v3 = vld [vmem:[%s3006_s1 + $0x80] sm:$0xff]   ;;  %2245 = vmatpush3.bf16.msra.mxu0 %v1324_v2  ;;  %v1851_v10 = vld [vmem:[%s3006_s1 + $0x88] sm:$0xff]   ;;  %v1852_v16 = vld [vmem:[%s3006_s1 + $0x90] sm:$0xff]  }
   0x5   :  { %2277 = vmatpush3.bf16.msra.mxu1 %v1850_v3  ;;  %2247 = vmatprep.subr.bf16.mxu0 %v1843_v4  ;;  %v1845_v17 = vld [vmem:[%s3006_s1 + $0x58] sm:$0xff]   ;;  %v2583_v19 = vsub.s32 %v25_v13, %v27_v14  ;;  %v12_v20 = vld [vmem:[%s3005_s0] sm:$0xff]  ;;  %v1847_v37 = vld [vmem:[%s3006_s1 + $0x68] sm:$0xff]  }
   0x6   :  { %2279 = vmatprep.subr.bf16.mxu1 %v1859_v5  ;;  %v1861_v18 = vld [vmem:[%s3006_s1 + $0xd8] sm:$0xff]   ;;  %v14_v23 = vunpack.c.l.bf16 %v12_v20  ;;  %v15_v24 = vunpack.c.h.bf16 %v12_v20  ;;  %v1846_v25 = vld [vmem:[%s3006_s1 + $0x60] sm:$0xff]   ;;  %v1863_v38 = vld [vmem:[%s3006_s1 + $0xe8] sm:$0xff]  }
   0x7   :  { %v1837_v21 = vld [vmem:[%s3006_s1 + $0x18] sm:$0xff]   ;;  %v1862_v26 = vld [vmem:[%s3006_s1 + $0xe0] sm:$0xff]   ;;  %v1839_v49 = vld [vmem:[%s3006_s1 + $0x28] sm:$0xff]  }
   0x8   :  { %2249 = vmatpush3.bf16.msra.mxu0 %v1835_v9  ;;  %v1853_v22 = vld [vmem:[%s3006_s1 + $0x98] sm:$0xff]   ;;  %v29_v27 = vrot.slane %v14_v23, %v2583_v19  ;;  %v22_v28 = vcombine.high %v14_v23, %v14_v23  ;;  %v2602_v29 = vrot.slane %v15_v24, %v2583_v19  ;;  %v39_v30 = vcombine.high %v15_v24, %v15_v24  ;;  %v1838_v31 = vld [vmem:[%s3006_s1 + $0x20] sm:$0xff]   ;;  %v1855_v50 = vld [vmem:[%s3006_s1 + $0xa8] sm:$0xff]  }
   0x9   :  { %2281 = vmatpush3.bf16.msra.mxu1 %v1851_v10  ;;  %2251 = vmatprep.subr.bf16.mxu0 %v1844_v11  ;;  %v1854_v32 = vld [vmem:[%s3006_s1 + $0xa0] sm:$0xff]   ;;  %v1848_v53 = vld [vmem:[%s3006_s1 + $0x70] sm:$0xff]   ;;  %v1849_v5 = vld [vmem:[%s3006_s1 + $0x78] sm:$0xff]  }
   0xa   :  { %2283 = vmatprep.subr.bf16.mxu1 %v1860_v12  ;;  %v37_v33 = vcombine.high %v29_v27, %v29_v27  ;;  %v36_v34 = vrot.slane %v22_v28, %v2583_v19  ;;  %v107_v35 = vsel %vm106_vm0, %v29_v27, 0.0  ;;  %v54_v36 = vcombine.high %v2602_v29, %v2602_v29  ;;  %v1864_v54 = vld [vmem:[%s3006_s1 + $0xf0] sm:$0xff]   ;;  %v1865_v6 = vld [vmem:[%s3006_s1 + $0xf8] sm:$0xff]  }
   0xb   :  { %v108_v39 = vrot.slane %v107_v35, 4  ;;  %v2621_v40 = vrot.slane %v39_v30, %v2583_v19  ;;  %v1840_v1 = vld [vmem:[%s3006_s1 + $0x30] sm:$0xff]  }
   0xc   :  { %2253 = vmatpush3.bf16.msra.mxu0 %v1836_v15  ;;  %v114_v41 = vsel %vm106_vm0, %v37_v33, 0.0  ;;  %v38_v42 = vcombine.high %v36_v34, %v36_v34  ;;  %v121_v43 = vsel %vm106_vm0, %v36_v34, 0.0  ;;  %v142_v44 = vsel %vm106_vm0, %v54_v36, 0.0  ;;  %v1856_v2 = vld [vmem:[%s3006_s1 + $0xb0] sm:$0xff]   ;;  %v1866_v34 = vld [vmem:[%s3006_s1 + $0x100] sm:$0xff]  }
   0xd   :  { %2285 = vmatpush3.bf16.msra.mxu1 %v1852_v16  ;;  %2255 = vmatprep.subr.bf16.mxu0 %v1845_v17  ;;  %v115_v45 = vrot.slane %v114_v41, 4  ;;  %v109_v46 = vadd.f32 %v108_v39, %v107_v35  ;;  %v122_v47 = vrot.slane %v121_v43, 4  ;;  %v143_v48 = vrot.slane %v142_v44, 4  ;;  %v1841_v17 = vld [vmem:[%s3006_s1 + $0x38] sm:$0xff]   ;;  %v13_v39 = vld [vmem:[%s3005_s0 + $0x8] sm:$0xff] }
   0xe   :  { %2287 = vmatprep.subr.bf16.mxu1 %v1861_v18  ;;  %v128_v51 = vsel %vm106_vm0, %v38_v42, 0.0  ;;  %v55_v52 = vcombine.high %v2621_v40, %v2621_v40  ;;  %v1857_v18 = vld [vmem:[%s3006_s1 + $0xb8] sm:$0xff]  }
   0xf   :  { %v116_v55 = vadd.f32 %v115_v45, %v114_v41  ;;  %v129_v56 = vrot.slane %v128_v51, 4  ;;  %v110_v57 = vrot.slane %v109_v46, 2  ;;  %v123_v58 = vadd.f32 %v122_v47, %v121_v43  ;;  %v1882_v41 = vld [vmem:[%s3006_s1 + $0x180] sm:$0xff]   ;;  %v1891_v45 = vld [vmem:[%s3006_s1 + $0x1c8] sm:$0xff]  }
  0x10   :  { %2257 = vmatpush3.bf16.msra.mxu0 %v1837_v21  ;;  %v144_v59 = vadd.f32 %v143_v48, %v142_v44  ;;  %v156_v60 = vsel %vm106_vm0, %v55_v52, 0.0  ;;  %v16_v43 = vunpack.c.l.bf16 %v13_v39  ;;  %v17_v44 = vunpack.c.h.bf16 %v13_v39  ;;  %v1867_v47 = vld [vmem:[%s3006_s1 + $0x108] sm:$0xff]   ;;  %v1876_v52 = vld [vmem:[%s3006_s1 + $0x150] sm:$0xff]  }
  0x11   :  { %2289 = vmatpush3.bf16.msra.mxu1 %v1853_v22  ;;  %2259 = vmatprep.subr.bf16.mxu0 %v1846_v25  ;;  %v117_v61 = vrot.slane %v116_v55, 2  ;;  %v130_v62 = vadd.f32 %v129_v56, %v128_v51  ;;  %v111_v63 = vadd.f32 %v110_v57, %v109_v46  ;;  %v124_v0 = vrot.slane %v123_v58, 2  ;;  %v1874_v25 = vld [vmem:[%s3006_s1 + $0x140] sm:$0xff]  }
  0x12   :  { %2291 = vmatprep.subr.bf16.mxu1 %v1862_v26  ;;  %v145_v3 = vrot.slane %v144_v59, 2  ;;  %v157_v4 = vrot.slane %v156_v60, 4  ;;  %v1890_v26 = vld [vmem:[%s3006_s1 + $0x1c0] sm:$0xff]   ;;  %v135_v46 = vsel %vm106_vm0, %v2602_v29, 0.0  ;;  %v80_v51 = vrot.slane %v17_v44, %v2583_v19 }
  0x13   :  { %v118_v7 = vadd.f32 %v117_v61, %v116_v55  ;;  %v131_v8 = vrot.slane %v130_v62, 2  ;;  %v112_v9 = vrot.slane %v111_v63, 1  ;;  %v125_v10 = vadd.f32 %v124_v0, %v123_v58  ;;  %v1868_v61 = vld [vmem:[%s3006_s1 + $0x110] sm:$0xff]  }
  0x14   :  { %2261 = vmatpush3.bf16.msra.mxu0 %v1838_v31  ;;  %v146_v11 = vadd.f32 %v145_v3, %v144_v59  ;;  %v158_v12 = vadd.f32 %v157_v4, %v156_v60  ;;  %v149_v29 = vsel %vm106_vm0, %v2621_v40, 0.0  ;;  %v136_v55 = vrot.slane %v135_v46, 4  ;;  %v1892_v40 = vld [vmem:[%s3006_s1 + $0x1d0] sm:$0xff]  }
  0x15   :  { %2293 = vmatpush3.bf16.msra.mxu1 %v1854_v32  ;;  %2263 = vmatprep.subr.bf16.mxu0 %v1847_v37  ;;  %v119_v13 = vrot.slane %v118_v7, 1  ;;  %v132_v14 = vadd.f32 %v131_v8, %v130_v62  ;;  %v113_v15 = vadd.f32 %v112_v9, %v111_v63  ;;  %v126_v16 = vrot.slane %v125_v10, 1  ;;  %v1875_v37 = vld [vmem:[%s3006_s1 + $0x148] sm:$0xff]   ;;  %v1884_v3 = vld [vmem:[%s3006_s1 + $0x190] sm:$0xff]   ;;  %v1893_v8 = vld [vmem:[%s3006_s1 + $0x1d8] sm:$0xff]  }
  0x16   :  { %2295 = vmatprep.subr.bf16.mxu1 %v1863_v38  ;;  %v147_v20 = vrot.slane %v146_v11, 1  ;;  %v159_v21 = vrot.slane %v158_v12, 2  ;;  %v88_v58 = vcombine.high %v80_v51, %v80_v51  ;;  %v2707_v59 = vsel %vm106_vm0, %v80_v51, 0.0 }
  0x17   :  { %v120_v22 = vadd.f32 %v119_v13, %v118_v7  ;;  %v133_v23 = vrot.slane %v132_v14, 1  ;;  %v127_v24 = vadd.f32 %v126_v16, %v125_v10  ;;  %v220_v27 = vmul.f32 0.5, %v113_v15 }
  0x18   :  { %2265 = vmatpush3.bf16.msra.mxu0 %v1839_v49  ;;  %v148_v28 = vadd.f32 %v147_v20, %v146_v11  ;;  %v160_v30 = vadd.f32 %v159_v21, %v158_v12  ;;  %v2687_v49 = vrot.slane %v16_v43, %v2583_v19  ;;  %v150_v62 = vrot.slane %v149_v29, 4  ;;  %v1869_v11 = vld [vmem:[%s3006_s1 + $0x118] sm:$0xff]  }
  0x19   :  { %2297 = vmatpush3.bf16.msra.mxu1 %v1855_v50  ;;  %2267 = vmatprep.subr.bf16.mxu0 %v1848_v53  ;;  %v221_v31 = vmul.f32 0.5, %v120_v22  ;;  %v134_v32 = vadd.f32 %v133_v23, %v132_v14  ;;  %v222_v33 = vmul.f32 0.5, %v127_v24  ;;  %v56_v50 = vcombine.high %v16_v43, %v16_v43 }
  0x1a   :  { %2299 = vmatprep.subr.bf16.mxu1 %v1864_v54  ;;  %v161_v35 = vrot.slane %v160_v30, 1  ;;  %v225_v38 = vmul.f32 0.5, %v148_v28  ;;  %v73_v53 = vcombine.high %v17_v44, %v17_v44  ;;  %v1883_v54 = vld [vmem:[%s3006_s1 + $0x188] sm:$0xff]   ;;  %v71_v56 = vcombine.high %v2687_v49, %v2687_v49 }
  0x1b   :  { %812 = vmatprep.mubr.f32.mxu0 %v221_v31  ;;  %v223_v36 = vmul.f32 0.5, %v134_v32  ;;  %v2701_v57 = vrot.slane %v56_v50, %v2583_v19  ;;  %v137_v4 = vadd.f32 %v136_v55, %v135_v46  ;;  %v151_v12 = vadd.f32 %v150_v62, %v149_v29 }
  0x1c   :  { %2269 = vmatpush3.bf16.msra.mxu0 %v1840_v1  ;;  %v162_v42 = vadd.f32 %v161_v35, %v160_v30  ;;  %v87_v60 = vrot.slane %v73_v53, %v2583_v19  ;;  %v170_v63 = vsel %vm106_vm0, %v71_v56, 0.0  ;;  %v2717_v1 = vsel %vm106_vm0, %v88_v58, 0.0 }
  0x1d   :  { %2301 = vmatpush3.bf16.msra.mxu1 %v1856_v2  ;;  %2271 = vmatprep.subr.bf16.mxu0 %v1849_v5  ;;  %v72_v0 = vcombine.high %v2701_v57, %v2701_v57  ;;  %v1877_v2 = vld [vmem:[%s3006_s1 + $0x158] sm:$0xff]   ;;  %v171_v19 = vrot.slane %v170_v63, 4 }
  0x1e   :  { %2303 = vmatprep.subr.bf16.mxu1 %v1865_v6  ;;  %882 = vmatprep.mubr.f32.mxu1 %v223_v36  ;;  %v227_v48 = vmul.f32 0.5, %v162_v42  ;;  %v89_v6 = vcombine.high %v87_v60, %v87_v60  ;;  %v2727_v7 = vsel %vm106_vm0, %v87_v60, 0.0 }
  0x1f   :  { %v184_v5 = vsel %vm106_vm0, %v72_v0, 0.0  ;;  %v172_v9 = vadd.f32 %v171_v19, %v170_v63 }
  0x20   :  { %2273 = vmatpush3.bf16.msra.mxu0 %v1841_v17  ;;  %v185_v10 = vrot.slane %v184_v5, 4  ;;  %v2736_v13 = vsel %vm106_vm0, %v89_v6, 0.0 }
  0x21   :  { %2305 = vmatpush3.bf16.msra.mxu1 %v1857_v18  ;;  %2307 = vmatprep.subr.bf16.mxu0 %v1874_v25 }
  0x22   :  { %2339 = vmatprep.subr.bf16.mxu1 %v1890_v26 }
  0x23   :  { %813 = vmatmul.mubr.f32.vlgmr.msra.gmra.mrb[0].mxu0 %v220_v27 }
  0x24   :  { %2309 = vmatpush3.bf16.msra.mxu0 %v1866_v34  ;;  %883 = vmatmul.mubr.f32.vlgmr.msra.gmra.mrb[0].mxu1 %v222_v33 }
  0x25   :  { %2311 = vmatprep.subr.bf16.mxu0 %v1875_v37  ;;  %2341 = vmatpush3.bf16.msra.mxu1 %v1882_v41 }
  0x26   :  { %952 = vmatprep.mubr.f32.mxu0 %v225_v38  ;;  %2343 = vmatprep.subr.bf16.mxu1 %v1891_v45 }
  0x27   :  { %1022 = vmatprep.mubr.f32.mxu1 %v227_v48 }
  0x28   :  { %2313 = vmatpush3.bf16.msra.mxu0 %v1867_v47 }
  0x29   :  { %2315 = vmatprep.subr.bf16.mxu0 %v1876_v52  ;;  %2345 = vmatpush3.bf16.msra.mxu1 %v1883_v54 }
  0x2a   :  { %2347 = vmatprep.subr.bf16.mxu1 %v1892_v40 }
  0x2c   :  { %2317 = vmatpush3.bf16.msra.mxu0 %v1868_v61 }
  0x2d   :  { %2319 = vmatprep.subr.bf16.mxu0 %v1877_v2 }
  0x2e   :  { %7 = vsyncpa [#allocation3], 0  ;;  %2349 = vmatpush3.bf16.msra.mxu1 %v1884_v3  ;;  %v1878_v14 = vld [vmem:[%s3006_s1 + $0x160] sm:$0xff]   ;;  %v186_v15 = vadd.f32 %v185_v10, %v184_v5  ;;  %v1885_v16 = vld [vmem:[%s3006_s1 + $0x198] sm:$0xff]   ;;  %v138_v17 = vrot.slane %v137_v4, 2  ;;  %v173_v20 = vrot.slane %v172_v9, 2 }
  0x2f   :  { %2351 = vmatprep.subr.bf16.mxu1 %v1893_v8  ;;  %v1894_v18 = vld [vmem:[%s3006_s1 + $0x1e0] sm:$0xff]   ;;  %v152_v22 = vrot.slane %v151_v12, 2  ;;  %v1879_v23 = vld [vmem:[%s3006_s1 + $0x168] sm:$0xff]   ;;  %v1880_v32 = vld [vmem:[%s3006_s1 + $0x170] sm:$0xff]   ;;  %v163_v62 = vsel %vm106_vm0, %v2687_v49, 0.0  ;;  %v177_v2 = vsel %vm106_vm0, %v2701_v57, 0.0 }
  0x30   :  { %2321 = vmatpush3.bf16.msra.mxu0 %v1869_v11  ;;  %v1870_v21 = vld [vmem:[%s3006_s1 + $0x120] sm:$0xff]   ;;  %v187_v24 = vrot.slane %v186_v15, 2  ;;  %v139_v26 = vadd.f32 %v138_v17, %v137_v4  ;;  %v1895_v27 = vld [vmem:[%s3006_s1 + $0x1e8] sm:$0xff]   ;;  %v174_v28 = vadd.f32 %v173_v20, %v172_v9  ;;  %v1896_v36 = vld [vmem:[%s3006_s1 + $0x1f0] sm:$0xff]   ;;  %v164_v19 = vrot.slane %v163_v62, 4 }
  0x31   :  { %2323 = vmatprep.subr.bf16.mxu0 %v1878_v14  ;;  %v1886_v25 = vld [vmem:[%s3006_s1 + $0x1a0] sm:$0xff]   ;;  %v1871_v30 = vld [vmem:[%s3006_s1 + $0x128] sm:$0xff]   ;;  %v153_v31 = vadd.f32 %v152_v22, %v151_v12  ;;  %v1872_v38 = vld [vmem:[%s3006_s1 + $0x130] sm:$0xff]   ;;  %v199_v4 = vrot.slane %v2717_v1, 4  ;;  %v178_v6 = vrot.slane %v177_v2, 4  ;;  %v213_v8 = vrot.slane %v2736_v13, 4 }
  0x32   :  { %2353 = vmatpush3.bf16.msra.mxu1 %v1885_v16  ;;  %v188_v33 = vadd.f32 %v187_v24, %v186_v15  ;;  %v1887_v34 = vld [vmem:[%s3006_s1 + $0x1a8] sm:$0xff]   ;;  %v140_v35 = vrot.slane %v139_v26, 1  ;;  %v175_v37 = vrot.slane %v174_v28, 1  ;;  %v1881_v41 = vld [vmem:[%s3006_s1 + $0x178] sm:$0xff]   ;;  %v1888_v43 = vld [vmem:[%s3006_s1 + $0x1b0] sm:$0xff]   ;;  %v165_v10 = vadd.f32 %v164_v19, %v163_v62 }
  0x33   :  { %2355 = vmatprep.subr.bf16.mxu1 %v1894_v18  ;;  %v154_v39 = vrot.slane %v153_v31, 1  ;;  %v1897_v45 = vld [vmem:[%s3006_s1 + $0x1f8] sm:$0xff]   ;;  %v1906_v50 = vld [vmem:[%s3006_s1 + $0x240] sm:$0xff]   ;;  %v1907_v58 = vld [vmem:[%s3006_s1 + $0x248] sm:$0xff]   ;;  %v200_v12 = vadd.f32 %v199_v4, %v2717_v1  ;;  %v179_v15 = vadd.f32 %v178_v6, %v177_v2  ;;  %v214_v17 = vadd.f32 %v213_v8, %v2736_v13 }
  0x34   :  { %2325 = vmatpush3.bf16.msra.mxu0 %v1870_v21  ;;  %v189_v42 = vrot.slane %v188_v33, 1  ;;  %v141_v44 = vadd.f32 %v140_v35, %v139_v26  ;;  %v176_v46 = vadd.f32 %v175_v37, %v174_v28  ;;  %v1873_v47 = vld [vmem:[%s3006_s1 + $0x138] sm:$0xff]   ;;  %v1922_v53 = vld [vmem:[%s3006_s1 + $0x2c0] sm:$0xff]   ;;  %v1923_v61 = vld [vmem:[%s3006_s1 + $0x2c8] sm:$0xff]   ;;  %v166_v20 = vrot.slane %v165_v10, 2 }
  0x35   :  { %2327 = vmatprep.subr.bf16.mxu0 %v1879_v23  ;;  %v155_v48 = vadd.f32 %v154_v39, %v153_v31  ;;  %v1889_v52 = vld [vmem:[%s3006_s1 + $0x1b8] sm:$0xff]   ;;  %v1898_v55 = vld [vmem:[%s3006_s1 + $0x200] sm:$0xff]   ;;  %v1899_v63 = vld [vmem:[%s3006_s1 + $0x208] sm:$0xff]   ;;  %v201_v21 = vrot.slane %v200_v12, 2  ;;  %v180_v23 = vrot.slane %v179_v15, 2  ;;  %v215_v24 = vrot.slane %v214_v17, 2 }
  0x36   :  { %2357 = vmatpush3.bf16.msra.mxu1 %v1886_v25  ;;  %v190_v51 = vadd.f32 %v189_v42, %v188_v33  ;;  %v224_v29 = vmul.f32 0.5, %v141_v44  ;;  %v229_v54 = vmul.f32 0.5, %v176_v46  ;;  %v1914_v60 = vld [vmem:[%s3006_s1 + $0x280] sm:$0xff]   ;;  %v1908_v0 = vld [vmem:[%s3006_s1 + $0x250] sm:$0xff]   ;;  %v1915_v49 = vld [vmem:[%s3006_s1 + $0x288] sm:$0xff]   ;;  %v167_v26 = vadd.f32 %v166_v20, %v165_v10 }
  0x37   :  { %2359 = vmatprep.subr.bf16.mxu1 %v1895_v27  ;;  %v226_v56 = vmul.f32 0.5, %v155_v48  ;;  %v1924_v3 = vld [vmem:[%s3006_s1 + $0x2d0] sm:$0xff]   ;;  %v1909_v57 = vld [vmem:[%s3006_s1 + $0x258] sm:$0xff]   ;;  %v1910_v16 = vld [vmem:[%s3006_s1 + $0x260] sm:$0xff]   ;;  %v202_v28 = vadd.f32 %v201_v21, %v200_v12  ;;  %v181_v31 = vadd.f32 %v180_v23, %v179_v15  ;;  %v216_v33 = vadd.f32 %v215_v24, %v214_v17 }
  0x38   :  { %2329 = vmatpush3.bf16.msra.mxu0 %v1871_v30  ;;  %v231_v40 = vmul.f32 0.5, %v190_v51  ;;  %v1900_v5 = vld [vmem:[%s3006_s1 + $0x210] sm:$0xff]   ;;  %v1925_v11 = vld [vmem:[%s3006_s1 + $0x2d8] sm:$0xff]   ;;  %v1926_v1 = vld [vmem:[%s3006_s1 + $0x2e0] sm:$0xff]   ;;  %v168_v35 = vrot.slane %v167_v26, 1  ;;  %v192_v2 = vrot.slane %v2707_v59, 4 }
  0x39   :  { %2331 = vmatprep.subr.bf16.mxu0 %v1880_v32  ;;  %v1916_v9 = vld [vmem:[%s3006_s1 + $0x290] sm:$0xff]   ;;  %v1901_v14 = vld [vmem:[%s3006_s1 + $0x218] sm:$0xff]   ;;  %v1902_v22 = vld [vmem:[%s3006_s1 + $0x220] sm:$0xff]   ;;  %v203_v37 = vrot.slane %v202_v28, 1  ;;  %v182_v39 = vrot.slane %v181_v31, 1  ;;  %v217_v42 = vrot.slane %v216_v33, 1 }
  0x3a   :  { %2361 = vmatpush3.bf16.msra.mxu1 %v1887_v34  ;;  %v1917_v18 = vld [vmem:[%s3006_s1 + $0x298] sm:$0xff]   ;;  %v1911_v13 = vld [vmem:[%s3006_s1 + $0x268] sm:$0xff]   ;;  %v1918_v25 = vld [vmem:[%s3006_s1 + $0x2a0] sm:$0xff]   ;;  %v169_v44 = vadd.f32 %v168_v35, %v167_v26  ;;  %v193_v6 = vadd.f32 %v192_v2, %v2707_v59 }
  0x3b   :  { %2363 = vmatprep.subr.bf16.mxu1 %v1896_v36  ;;  %v1927_v27 = vld [vmem:[%s3006_s1 + $0x2e8] sm:$0xff]   ;;  %v1912_v32 = vld [vmem:[%s3006_s1 + $0x270] sm:$0xff]   ;;  %v204_v46 = vadd.f32 %v203_v37, %v202_v28  ;;  %v183_v48 = vadd.f32 %v182_v39, %v181_v31  ;;  %v218_v51 = vadd.f32 %v217_v42, %v216_v33  ;;  %v1941_v4 = vld [vmem:[%s3006_s1 + $0x358] sm:$0xff]  }
  0x3c   :  { %2333 = vmatpush3.bf16.msra.mxu0 %v1872_v38  ;;  %v1903_v30 = vld [vmem:[%s3006_s1 + $0x228] sm:$0xff]   ;;  %v1928_v36 = vld [vmem:[%s3006_s1 + $0x2f0] sm:$0xff]   ;;  %v1933_v8 = vld [vmem:[%s3006_s1 + $0x318] sm:$0xff]  }
  0x3d   :  { %2335 = vmatprep.subr.bf16.mxu0 %v1881_v41  ;;  %v1919_v34 = vld [vmem:[%s3006_s1 + $0x2a8] sm:$0xff]   ;;  %v1904_v38 = vld [vmem:[%s3006_s1 + $0x230] sm:$0xff]   ;;  %v1913_v41 = vld [vmem:[%s3006_s1 + $0x278] sm:$0xff]  }
  0x3e   :  { %2365 = vmatpush3.bf16.msra.mxu1 %v1888_v43  ;;  %v1920_v43 = vld [vmem:[%s3006_s1 + $0x2b0] sm:$0xff]   ;;  %v1931_v62 = vld [vmem:[%s3006_s1 + $0x308] sm:$0xff]   ;;  %v1942_v10 = vld [vmem:[%s3006_s1 + $0x360] sm:$0xff]  }
  0x3f   :  { %2367 = vmatprep.subr.bf16.mxu1 %v1897_v45  ;;  %v1929_v45 = vld [vmem:[%s3006_s1 + $0x2f8] sm:$0xff]   ;;  %v1932_v19 = vld [vmem:[%s3006_s1 + $0x310] sm:$0xff]   ;;  %v1958_v12 = vld [vmem:[%s3006_s1 + $0x3e0] sm:$0xff]  }
  0x40   :  { %2337 = vmatpush3.bf16.msra.mxu0 %v1873_v47  ;;  %v1905_v47 = vld [vmem:[%s3006_s1 + $0x238] sm:$0xff]   ;;  %v1943_v15 = vld [vmem:[%s3006_s1 + $0x368] sm:$0xff]   ;;  %v1944_v21 = vld [vmem:[%s3006_s1 + $0x370] sm:$0xff]  }
  0x41   :  { %2371 = vmatprep.subr.bf16.mxu0 %v1906_v50  ;;  %v1938_v50 = vld [vmem:[%s3006_s1 + $0x340] sm:$0xff]   ;;  %v1949_v59 = vld [vmem:[%s3006_s1 + $0x398] sm:$0xff]   ;;  %v1935_v20 = vld [vmem:[%s3006_s1 + $0x328] sm:$0xff]  }
  0x42   :  { %2369 = vmatpush3.bf16.msra.mxu1 %v1889_v52  ;;  %v1921_v52 = vld [vmem:[%s3006_s1 + $0x2b8] sm:$0xff]   ;;  %v1936_v24 = vld [vmem:[%s3006_s1 + $0x330] sm:$0xff]  }
  0x43   :  { %953 = vmatmul.mubr.f32.vlgmr.msra.gmra.mrb[2].mxu0 %v224_v29  ;;  %2403 = vmatprep.subr.bf16.mxu1 %v1922_v53  ;;  %v228_v29 = vmul.f32 0.5, %v169_v44  ;;  %v1954_v53 = vld [vmem:[%s3006_s1 + $0x3c0] sm:$0xff]   ;;  %v1945_v26 = vld [vmem:[%s3006_s1 + $0x378] sm:$0xff]  }
  0x44   :  { %2373 = vmatpush3.bf16.msra.mxu0 %v1898_v55  ;;  %1092 = vmatprep.mubr.f32.mxu0 %v229_v54  ;;  %v233_v54 = vmul.f32 0.5, %v204_v46  ;;  %v1930_v55 = vld [vmem:[%s3006_s1 + $0x300] sm:$0xff]   ;;  %v1937_v31 = vld [vmem:[%s3006_s1 + $0x338] sm:$0xff]  }
  0x45   :  { %1023 = vmatmul.mubr.f32.vlgmr.msra.gmra.mrb[2].mxu1 %v226_v56  ;;  %2375 = vmatprep.subr.bf16.mxu0 %v1907_v58  ;;  %v230_v56 = vmul.f32 0.5, %v183_v48  ;;  %v1939_v58 = vld [vmem:[%s3006_s1 + $0x348] sm:$0xff]   ;;  %v1953_v33 = vld [vmem:[%s3006_s1 + $0x3b8] sm:$0xff]  }
  0x46   :  { %2405 = vmatpush3.bf16.msra.mxu1 %v1914_v60  ;;  %1162 = vmatprep.mubr.f32.mxu1 %v231_v40  ;;  %v235_v40 = vmul.f32 0.5, %v218_v51  ;;  %v1946_v60 = vld [vmem:[%s3006_s1 + $0x380] sm:$0xff]  }
  0x47   :  { %2407 = vmatprep.subr.bf16.mxu1 %v1923_v61  ;;  %v1955_v61 = vld [vmem:[%s3006_s1 + $0x3c8] sm:$0xff]  }
  0x48   :  { %2377 = vmatpush3.bf16.msra.mxu0 %v1899_v63  ;;  %v1940_v63 = vld [vmem:[%s3006_s1 + $0x350] sm:$0xff]  }
  0x49   :  { %2379 = vmatprep.subr.bf16.mxu0 %v1908_v0  ;;  %v1947_v0 = vld [vmem:[%s3006_s1 + $0x388] sm:$0xff]  }
  0x4a   :  { %2409 = vmatpush3.bf16.msra.mxu1 %v1915_v49  ;;  %v1956_v49 = vld [vmem:[%s3006_s1 + $0x3d0] sm:$0xff]  }
  0x4b   :  { %2411 = vmatprep.subr.bf16.mxu1 %v1924_v3  ;;  %v206_v3 = vrot.slane %v2727_v7, 4 }
  0x4c   :  { %2381 = vmatpush3.bf16.msra.mxu0 %v1900_v5  ;;  %v1948_v5 = vld [vmem:[%s3006_s1 + $0x390] sm:$0xff]  }
  0x4d   :  { %2383 = vmatprep.subr.bf16.mxu0 %v1909_v57  ;;  %v1957_v57 = vld [vmem:[%s3006_s1 + $0x3d8] sm:$0xff]  }
  0x4e   :  { %2413 = vmatpush3.bf16.msra.mxu1 %v1916_v9  ;;  %v207_v9 = vadd.f32 %v206_v3, %v2727_v7  ;;  %v1934_v7 = vld [vmem:[%s3006_s1 + $0x320] sm:$0xff]  }
  0x4f   :  { %2415 = vmatprep.subr.bf16.mxu1 %v1925_v11  ;;  %v194_v11 = vrot.slane %v193_v6, 2 }
  0x50   :  { %2385 = vmatpush3.bf16.msra.mxu0 %v1901_v14  ;;  %v208_v14 = vrot.slane %v207_v9, 2 }
  0x51   :  { %2387 = vmatprep.subr.bf16.mxu0 %v1910_v16  ;;  %v1950_v16 = vld [vmem:[%s3006_s1 + $0x3a0] sm:$0xff]   ;;  %v195_v17 = vadd.f32 %v194_v11, %v193_v6 }
  0x52   :  { %2417 = vmatpush3.bf16.msra.mxu1 %v1917_v18  ;;  %v1959_v18 = vld [vmem:[%s3006_s1 + $0x3e8] sm:$0xff]  }
  0x53   :  { %2419 = vmatprep.subr.bf16.mxu1 %v1926_v1  ;;  %v209_v1 = vadd.f32 %v208_v14, %v207_v9  ;;  %v196_v23 = vrot.slane %v195_v17, 1 }
  0x54   :  { %2389 = vmatpush3.bf16.msra.mxu0 %v1902_v22  ;;  %v1951_v22 = vld [vmem:[%s3006_s1 + $0x3a8] sm:$0xff]  }
  0x55   :  { %2391 = vmatprep.subr.bf16.mxu0 %v1911_v13  ;;  %v1960_v13 = vld [vmem:[%s3006_s1 + $0x3f0] sm:$0xff]   ;;  %v197_v28 = vadd.f32 %v196_v23, %v195_v17 }
  0x56   :  { %2421 = vmatpush3.bf16.msra.mxu1 %v1918_v25  ;;  %v210_v25 = vrot.slane %v209_v1, 1 }
  0x57   :  { %2423 = vmatprep.subr.bf16.mxu1 %v1927_v27  ;;  %v1952_v27 = vld [vmem:[%s3006_s1 + $0x3b0] sm:$0xff]  }
  0x58   :  { %2393 = vmatpush3.bf16.msra.mxu0 %v1903_v30  ;;  %v1961_v30 = vld [vmem:[%s3006_s1 + $0x3f8] sm:$0xff]   ;;  %s2525_s1 = smov [#allocation2]  }
  0x59   :  { %2395 = vmatprep.subr.bf16.mxu0 %v1912_v32  ;;  %v211_v32 = vadd.f32 %v210_v25, %v209_v1  ;;  %s1315_s10 = sshll.u32 %s2525_s1, 4  ;;  %s1316_s10 = int_to_ptr.vmem [resolvable:$true] %s1315_s10 }
  0x5a   :  { %2425 = vmatpush3.bf16.msra.mxu1 %v1919_v34  ;;  %v232_v34 = vmul.f32 0.5, %v197_v28  ;;  %s2500_s11 = scalar_lea.vmem %s1316_s10, 16  ;;  %s2504_s12 = scalar_lea.vmem %s1316_s10, 32 }
  0x5b   :  { %2427 = vmatprep.subr.bf16.mxu1 %v1928_v36  ;;  %v234_v35 = vmul.f32 0.5, %v211_v32  ;;  %p2501_p0 = scmp.ne.s32.totalorder %s1316_s10, %s2500_s11  ;;  %p2505_p1 = scmp.lt.s32.totalorder %s1316_s10, %s1316_s10 }
  0x5c   :  { %2397 = vmatpush3.bf16.msra.mxu0 %v1904_v38  ;;  %p2506_p2 = scmp.lt.s32.totalorder %s2504_s12, %s2500_s11 }
  0x5d   :  { %2399 = vmatprep.subr.bf16.mxu0 %v1913_v41 }
  0x5e   :  { %2429 = vmatpush3.bf16.msra.mxu1 %v1920_v43  ;;  %p2507_p3 = por %p2506_p2, %p2505_p1 }
  0x5f   :  { %2431 = vmatprep.subr.bf16.mxu1 %v1929_v45 }
  0x60   :  { %2401 = vmatpush3.bf16.msra.mxu0 %v1905_v47  ;;  %p2508_p4 = pnand %p2507_p3, %p2501_p0 }
  0x61   :  { %2435 = vmatprep.subr.bf16.mxu0 %v1938_v50 }
  0x62   :  { %2433 = vmatpush3.bf16.msra.mxu1 %v1921_v52 }
  0x63   :  { %1093 = vmatmul.mubr.f32.vlgmr.msra.gmra.mrb[4].mxu0 %v228_v29  ;;  %2467 = vmatprep.subr.bf16.mxu1 %v1954_v53 }
  0x64   :  { %2437 = vmatpush3.bf16.msra.mxu0 %v1930_v55  ;;  %1232 = vmatprep.mubr.f32.mxu0 %v233_v54 }
  0x65   :  { %1163 = vmatmul.mubr.f32.vlgmr.msra.gmra.mrb[4].mxu1 %v230_v56  ;;  %2439 = vmatprep.subr.bf16.mxu0 %v1939_v58 }
  0x66   :  { %2469 = vmatpush3.bf16.msra.mxu1 %v1946_v60  ;;  %1302 = vmatprep.mubr.f32.mxu1 %v235_v40 }
  0x67   :  { %2471 = vmatprep.subr.bf16.mxu1 %v1955_v61 }
  0x68   :  { %2441 = vmatpush3.bf16.msra.mxu0 %v1931_v62 }
  0x69   :  { %2443 = vmatprep.subr.bf16.mxu0 %v1940_v63 }
  0x6a   :  { %2473 = vmatpush3.bf16.msra.mxu1 %v1947_v0 }
  0x6b   :  { %2475 = vmatprep.subr.bf16.mxu1 %v1956_v49 }
  0x6c   :  { %2445 = vmatpush3.bf16.msra.mxu0 %v1932_v19 }
  0x6d   :  { %2447 = vmatprep.subr.bf16.mxu0 %v1941_v4 }
  0x6e   :  { %2477 = vmatpush3.bf16.msra.mxu1 %v1948_v5 }
  0x6f   :  { %2479 = vmatprep.subr.bf16.mxu1 %v1957_v57 }
  0x70   :  { %2449 = vmatpush3.bf16.msra.mxu0 %v1933_v8 }
  0x71   :  { %2451 = vmatprep.subr.bf16.mxu0 %v1942_v10 }
  0x72   :  { %2481 = vmatpush3.bf16.msra.mxu1 %v1949_v59 }
  0x73   :  { %2483 = vmatprep.subr.bf16.mxu1 %v1958_v12 }
  0x74   :  { %2453 = vmatpush3.bf16.msra.mxu0 %v1934_v7 }
  0x75   :  { %2455 = vmatprep.subr.bf16.mxu0 %v1943_v15 }
  0x76   :  { %2485 = vmatpush3.bf16.msra.mxu1 %v1950_v16 }
  0x77   :  { %2487 = vmatprep.subr.bf16.mxu1 %v1959_v18 }
  0x78   :  { %2457 = vmatpush3.bf16.msra.mxu0 %v1935_v20 }
  0x79   :  { %2459 = vmatprep.subr.bf16.mxu0 %v1944_v21 }
  0x7a   :  { %2489 = vmatpush3.bf16.msra.mxu1 %v1951_v22 }
  0x7b   :  { %2491 = vmatprep.subr.bf16.mxu1 %v1960_v13 }
  0x7c   :  { %2461 = vmatpush3.bf16.msra.mxu0 %v1936_v24 }
  0x7d   :  { %2463 = vmatprep.subr.bf16.mxu0 %v1945_v26 }
  0x7e   :  { %2493 = vmatpush3.bf16.msra.mxu1 %v1952_v27 }
  0x7f   :  { %2495 = vmatprep.subr.bf16.mxu1 %v1961_v30 }
  0x80   :  { %2465 = vmatpush3.bf16.msra.mxu0 %v1937_v31 }
  0x82   :  { %2497 = vmatpush3.bf16.msra.mxu1 %v1953_v33 }
  0x83   :  { %1233 = vmatmul.mubr.f32.vlgmr.msra.gmra.mrb[6].mxu0 %v232_v34 }
  0x85   :  { %1303 = vmatmul.mubr.f32.vlgmr.msra.gmra.mrb[6].mxu1 %v234_v35 }
  0xf6   :  { %v1994_v36 = vpop.f32.mrb[0].mxu0 }
  0xf7   :  { %v1995_v37 = vpop.f32.mrb[1].mxu0  ;;  %v2029_v38 = vpop.f32.mrb[0].mxu1 }
  0xf8   :  { %v1996_v39 = vadd.f32 %v1995_v37, %v1994_v36  ;;  %v2030_v41 = vpop.f32.mrb[1].mxu1 }
  0xf9   :  { %v2031_v42 = vadd.f32 %v2030_v41, %v2029_v38 }
  0xfb   :  { %v885_v43 = vadd.f32 %v2031_v42, %v1996_v39 }
 0x116   :  { %v2064_v44 = vpop.f32.mrb[2].mxu0 }
 0x117   :  { %v2065_v45 = vpop.f32.mrb[3].mxu0 }
 0x118   :  { %v2066_v46 = vadd.f32 %v2065_v45, %v2064_v44  ;;  %v2099_v47 = vpop.f32.mrb[2].mxu1 }
 0x119   :  { %v2100_v48 = vpop.f32.mrb[3].mxu1 }
 0x11a   :  { %v955_v50 = vadd.f32 %v2066_v46, %v885_v43  ;;  %v2101_v51 = vadd.f32 %v2100_v48, %v2099_v47 }
 0x11c   :  { %v1025_v52 = vadd.f32 %v2101_v51, %v955_v50 }
 0x136   :  { %v2134_v29 = vpop.f32.mrb[4].mxu0 }
 0x137   :  { %v2135_v53 = vpop.f32.mrb[5].mxu0 }
 0x138   :  { %v2136_v54 = vadd.f32 %v2135_v53, %v2134_v29  ;;  %v2169_v55 = vpop.f32.mrb[4].mxu1 }
 0x139   :  { %v2170_v56 = vpop.f32.mrb[5].mxu1 }
 0x13a   :  { %v1095_v58 = vadd.f32 %v2136_v54, %v1025_v52  ;;  %v2171_v40 = vadd.f32 %v2170_v56, %v2169_v55 }
 0x13c   :  { %v1165_v60 = vadd.f32 %v2171_v40, %v1095_v58 }
 0x156   :  { %v2204_v61 = vpop.f32.mrb[6].mxu0 }
 0x157   :  { %v2205_v62 = vpop.f32.mrb[7].mxu0 }
 0x158   :  { %v2206_v63 = vadd.f32 %v2205_v62, %v2204_v61  ;;  %v2239_v0 = vpop.f32.mrb[6].mxu1 }
 0x159   :  { %v2240_v2 = vpop.f32.mrb[7].mxu1 }
 0x15a   :  { %v1235_v49 = vadd.f32 %v2206_v63, %v1165_v60  ;;  %v2241_v19 = vadd.f32 %v2240_v2, %v2239_v0 }
 0x15c   :  { %v1305_v3 = vadd.f32 %v2241_v19, %v1235_v49 }
 0x15e   :  { %1308 = vst [vmem:[#allocation2] sm:$0x1] %v1305_v3 }
 0x15f   :  { %2511 = shalt.err (!%p2508_p4)
}
 0x160   :  { %s2512_s15 = scalar_lea.hbm %s3007_s2, 16 }
 0x161   :  { %p2513_p5 = scmp.ne.s32.totalorder %s3007_s2, %s2512_s15  ;;  %p2516_p6 = scmp.lt.u32.totalorder %s2512_s15, %s3007_s2 }
 0x163   :  { %p2518_p7 = pnand %p2516_p6, %p2513_p5 }
 0x165   :  { %2521 = shalt.err (!%p2518_p7)
}
 0x166   :  { %1318 = dma.vmem_to_hbm [thread:$0]  %s1316_s10, 16, %s3007_s2, [#allocation3]  }
 0x167   :  { %2522 = dma.done.wait [#allocation3], 16  }
 0x168   :  { %2523 = vsyncadd [#allocation3], 4294967280 }
 0x169   :  { %1322 = vsyncpa [#allocation3], 1 }

</bundles_post_ra>
